<compile_context>
chip_gen: v7x
topology: tpu7x:2x2x1
jax: 0.10.0
libtpu: 0.0.40
codegen_flags: <defaults>
</compile_context>

<pallas_src>
import functools

import jax
import jax.numpy as jnp
import numpy as np
from jax.experimental import pallas as pl
from jax.experimental.pallas import tpu as pltpu

INPUT_SIZE = 14
INP = 16             # layer-0 input K padded to 16
HIDDEN = 24          # real hidden size
HP = 32              # per-gate padded hidden size (4*HP = 128 lanes)
GATES = 4 * HP       # 128
NUM_LAYERS = 2
D1, D2, D3 = 12, 6, 1
BP = 8               # padded batch (one sublane group); assert B <= BP

# -------- parameter-slab row layout (all rows, 256 lanes, f32) --------
ROW_WREC = 0          # rows   0..63 : blockdiag([W0h | 0], [0 | W1h])  (64, 256)
ROW_W0I  = 64         # rows  64..79 : layer-0 input->gates, lanes 0:128 (16, 128)
ROW_W1I  = 80         # rows  80..111: layer-1 input(h0)->gates, lanes 0:128
ROW_BIAS = 112        # row 112: b0, row 113: b1 (lanes 0:128)
ROW_HC   = 120        # rows 120..151: [h0_l0; c0_l0; h0_l1; c0_l1], BP rows each, lanes 0:32
ROW_WD1  = 152        # rows 152..183: dense1 W^T (24 real rows), lanes 0:12
ROW_WD2  = 184        # rows 184..195: dense2 W^T, lanes 0:6
ROW_WD3  = 200        # rows 200..205: dense3 W^T, lanes 0:1
ROW_BD   = 208        # rows 208/209/210: dense biases 1/2/3
SLAB_ROWS = 216
SLAB_LANES = 2 * GATES  # 256


def _apply_gates(g, c_prev):
    """g: (BP, 128) fused pre-activations in PyTorch gate order i,f,g,o."""
    sig = jax.nn.sigmoid(g)          # one full-vreg EUP pass
    th = jnp.tanh(g)                 # one full-vreg EUP pass
    i_g = sig[:, 0 * HP:1 * HP]
    f_g = sig[:, 1 * HP:2 * HP]
    g_g = th[:, 2 * HP:3 * HP]
    o_g = sig[:, 3 * HP:4 * HP]
    c_new = f_g * c_prev + i_g * g_g
    h_new = o_g * jnp.tanh(c_new)
    # Padded lanes stay exactly 0: zero weights/bias/state => i=f=o=0.5, g=0,
    # c_pad=0, h_pad=0, and downstream weight rows for pad lanes are zero.
    return h_new, c_new


def _lstm_dense_kernel(T,
                       x_ref,    # (T*BP, INP)  time-major, batch/K padded input
                       p_ref,    # (SLAB_ROWS, 256) packed parameter slab
                       out_ref): # (BP, 1)
    # ---- static sub-views of the parameter slab ----
    w_rec = p_ref[ROW_WREC:ROW_WREC + 2 * HP, :]           # (64, 256) blockdiag
    w0i = p_ref[ROW_W0I:ROW_W0I + INP, 0:GATES]            # (16, 128)
    w1i = p_ref[ROW_W1I:ROW_W1I + HP, 0:GATES]             # (32, 128)
    bias = p_ref[ROW_BIAS:ROW_BIAS + 2, 0:GATES]           # (2, 128)
    b0 = bias[0:1, :]
    b1b = jnp.broadcast_to(bias[1:2, :], (BP, GATES))      # hoisted broadcast

    state = p_ref[ROW_HC:ROW_HC + 4 * BP, 0:GATES]         # (32, 128)
    h0 = state[0 * BP:1 * BP, :HP]
    c0 = state[1 * BP:2 * BP, :HP]
    h1 = state[2 * BP:3 * BP, :HP]
    c1 = state[3 * BP:4 * BP, :HP]

    # ---- layer-0 input projection for every time step: one big matmul ----
    xg = jnp.dot(x_ref[...], w0i, preferred_element_type=jnp.float32) + b0  # (T*BP, 128)

    # ---- unrolled recurrence over T (small, static): 2 MXU pushes / step ----
    for t in range(T):
        h01 = jnp.concatenate([h0, h1], axis=1)                       # (BP, 64)
        r = jnp.dot(h01, w_rec, preferred_element_type=jnp.float32)   # (BP, 256)
        g0 = xg[t * BP:(t + 1) * BP, :] + r[:, :GATES]
        h0, c0 = _apply_gates(g0, c0)
        g1 = (jnp.dot(h0, w1i, preferred_element_type=jnp.float32)
              + r[:, GATES:] + b1b)
        h1, c1 = _apply_gates(g1, c1)

    # ---- dense head on the final layer-1 hidden state ----
    dense = p_ref[ROW_WD1:SLAB_ROWS, 0:GATES]                         # (64, 128)
    wd1 = dense[0:HP, :D1]
    wd2 = dense[ROW_WD2 - ROW_WD1:ROW_WD2 - ROW_WD1 + D1, :D2]
    wd3 = dense[ROW_WD3 - ROW_WD1:ROW_WD3 - ROW_WD1 + D2, :D3]
    bd1 = dense[ROW_BD - ROW_WD1:ROW_BD - ROW_WD1 + 1, :D1]
    bd2 = dense[ROW_BD - ROW_WD1 + 1:ROW_BD - ROW_WD1 + 2, :D2]
    bd3 = dense[ROW_BD - ROW_WD1 + 2:ROW_BD - ROW_WD1 + 3, :D3]

    z = jnp.dot(h1, wd1, preferred_element_type=jnp.float32) + bd1
    z = jnp.maximum(z, 0.0)
    z = jnp.dot(z, wd2, preferred_element_type=jnp.float32) + bd2
    z = jnp.maximum(z, 0.0)
    z = jnp.dot(z, wd3, preferred_element_type=jnp.float32) + bd3
    out_ref[...] = z.astype(out_ref.dtype)


# ---------------- load-time (host, numpy) parameter packing ----------------
def _fuse_gate_w_np(w, rows):
    """PyTorch (4H, K) gate-stacked weight -> (rows, 128) fused+padded slab."""
    w = np.asarray(w, np.float32)
    K = w.shape[1]
    wt = w.reshape(4, HIDDEN, K)
    out = np.zeros((rows, GATES), np.float32)
    for k in range(4):
        out[:K, k * HP:k * HP + HIDDEN] = wt[k].T
    return out


def _fuse_gate_b_np(b_ih, b_hh):
    b = (np.asarray(b_ih, np.float32) + np.asarray(b_hh, np.float32)).reshape(4, HIDDEN)
    out = np.zeros((GATES,), np.float32)
    for k in range(4):
        out[k * HP:k * HP + HIDDEN] = b[k]
    return out


def prepare_param_slab(params, h0, c0):
    """Build the single packed (216, 256) f32 parameter slab.  Call once."""
    slab = np.zeros((SLAB_ROWS, SLAB_LANES), np.float32)

    w0h = _fuse_gate_w_np(params['weight_hh_l0'], HP)
    w1h = _fuse_gate_w_np(params['weight_hh_l1'], HP)
    slab[ROW_WREC:ROW_WREC + HP, 0:GATES] = w0h
    slab[ROW_WREC + HP:ROW_WREC + 2 * HP, GATES:2 * GATES] = w1h

    slab[ROW_W0I:ROW_W0I + INP, 0:GATES] = _fuse_gate_w_np(params['weight_ih_l0'], INP)
    slab[ROW_W1I:ROW_W1I + HP, 0:GATES] = _fuse_gate_w_np(params['weight_ih_l1'], HP)
    slab[ROW_BIAS, 0:GATES] = _fuse_gate_b_np(params['bias_ih_l0'], params['bias_hh_l0'])
    slab[ROW_BIAS + 1, 0:GATES] = _fuse_gate_b_np(params['bias_ih_l1'], params['bias_hh_l1'])

    h0 = np.asarray(h0, np.float32)
    c0 = np.asarray(c0, np.float32)
    B = h0.shape[1]
    assert B <= BP
    slab[ROW_HC + 0 * BP:ROW_HC + 0 * BP + B, :HIDDEN] = h0[0]
    slab[ROW_HC + 1 * BP:ROW_HC + 1 * BP + B, :HIDDEN] = c0[0]
    slab[ROW_HC + 2 * BP:ROW_HC + 2 * BP + B, :HIDDEN] = h0[1]
    slab[ROW_HC + 3 * BP:ROW_HC + 3 * BP + B, :HIDDEN] = c0[1]

    slab[ROW_WD1:ROW_WD1 + HIDDEN, 0:D1] = np.asarray(params['dense1_w'], np.float32).T
    slab[ROW_WD2:ROW_WD2 + D1, 0:D2] = np.asarray(params['dense2_w'], np.float32).T
    slab[ROW_WD3:ROW_WD3 + D2, 0:D3] = np.asarray(params['dense3_w'], np.float32).T
    slab[ROW_BD, 0:D1] = np.asarray(params['dense1_b'], np.float32)
    slab[ROW_BD + 1, 0:D2] = np.asarray(params['dense2_b'], np.float32)
    slab[ROW_BD + 2, 0:D3] = np.asarray(params['dense3_b'], np.float32)
    return jnp.asarray(slab)


# ---------------- per-call path (only x prep + kernel launch) ----------------
@jax.jit
def lstm_forward(x, param_slab):
    """x: [B, T, 14] f32 (batch_first), B <= 8; returns [B, 1]."""
    B, T, IN = x.shape
    assert B <= BP and IN == INPUT_SIZE

    # Time-major, batch padded to BP sublanes, K padded 14 -> 16.
    x_tm = jnp.transpose(x, (1, 0, 2))                                 # (T, B, IN)
    x_p = jnp.zeros((T, BP, INP), jnp.float32).at[:, :B, :IN].set(x_tm)
    x_flat = x_p.reshape(T * BP, INP)

    out = pl.pallas_call(
        functools.partial(_lstm_dense_kernel, T),
        out_shape=jax.ShapeDtypeStruct((BP, 1), jnp.float32),
        in_specs=[pl.BlockSpec(memory_space=pltpu.MemorySpace.VMEM),
                  pl.BlockSpec(memory_space=pltpu.MemorySpace.VMEM)],
        out_specs=pl.BlockSpec(memory_space=pltpu.MemorySpace.VMEM),
    )(x_flat, param_slab)
    return out[:B]


# ---------------- pure-JAX reference (matches PyTorch eval forward) ----------------
def reference_forward(x, params, h0, c0):
    B, T, IN = x.shape
    H = HIDDEN

    def cell(x_t, h, c, wi, wh, bi, bh):
        g = x_t @ wi.T + bi + h @ wh.T + bh
        i = jax.nn.sigmoid(g[:, :H])
        f = jax.nn.sigmoid(g[:, H:2 * H])
        gg = jnp.tanh(g[:, 2 * H:3 * H])
        o = jax.nn.sigmoid(g[:, 3 * H:])
        c = f * c + i * gg
        h = o * jnp.tanh(c)
        return h, c

    h = [h0[0], h0[1]]
    c = [c0[0], c0[1]]
    for t in range(T):
        x_t = x[:, t, :]
        h[0], c[0] = cell(x_t, h[0], c[0], params['weight_ih_l0'],
                          params['weight_hh_l0'], params['bias_ih_l0'],
                          params['bias_hh_l0'])
        h[1], c[1] = cell(h[0], h[1], c[1], params['weight_ih_l1'],
                          params['weight_hh_l1'], params['bias_ih_l1'],
                          params['bias_hh_l1'])
    out = h[1]                                   # h_n[0][1] in the PyTorch module
    out = jnp.maximum(out @ params['dense1_w'].T + params['dense1_b'], 0.0)
    out = jnp.maximum(out @ params['dense2_w'].T + params['dense2_b'], 0.0)
    out = out @ params['dense3_w'].T + params['dense3_b']
    return out


def make_params(key):
    ks = jax.random.split(key, 14)

    def unif(k, shape, bound):
        return jax.random.uniform(k, shape, jnp.float32, -bound, bound)

    kH = 1.0 / np.sqrt(HIDDEN)
    return {
        'weight_ih_l0': unif(ks[0], (4 * HIDDEN, INPUT_SIZE), kH),
        'weight_hh_l0': unif(ks[1], (4 * HIDDEN, HIDDEN), kH),
        'bias_ih_l0':   unif(ks[2], (4 * HIDDEN,), kH),
        'bias_hh_l0':   unif(ks[3], (4 * HIDDEN,), kH),
        'weight_ih_l1': unif(ks[4], (4 * HIDDEN, HIDDEN), kH),
        'weight_hh_l1': unif(ks[5], (4 * HIDDEN, HIDDEN), kH),
        'bias_ih_l1':   unif(ks[6], (4 * HIDDEN,), kH),
        'bias_hh_l1':   unif(ks[7], (4 * HIDDEN,), kH),
        'dense1_w': unif(ks[8], (D1, HIDDEN), 1.0 / np.sqrt(HIDDEN)),
        'dense1_b': unif(ks[9], (D1,), 1.0 / np.sqrt(HIDDEN)),
        'dense2_w': unif(ks[10], (D2, D1), 1.0 / np.sqrt(D1)),
        'dense2_b': unif(ks[11], (D2,), 1.0 / np.sqrt(D1)),
        'dense3_w': unif(ks[12], (D3, D2), 1.0 / np.sqrt(D2)),
        'dense3_b': unif(ks[13], (D3,), 1.0 / np.sqrt(D2)),
    }


if __name__ == "__main__":
    key = jax.random.PRNGKey(0)
    k_params, k_x, k_hc = jax.random.split(key, 3)

    B, T = 4, 8
    params = make_params(k_params)
    x = jax.random.normal(k_x, (B, T, INPUT_SIZE), jnp.float32)

    # Module does h0 = c0 = torch.randn(2, B, 24); made deterministic here.
    hc = jax.random.normal(k_hc, (NUM_LAYERS, B, HIDDEN), jnp.float32)
    h0 = hc
    c0 = hc

    # Load-time packing (runs once, pure numpy on host).
    param_slab = prepare_param_slab(params, h0, c0)

    out = lstm_forward(x, param_slab)
    out = jax.block_until_ready(out)

    ref = reference_forward(x, params, h0, c0)
    assert out.shape == (B, 1)
    np.testing.assert_allclose(np.asarray(out), np.asarray(ref),
                               rtol=1e-4, atol=1e-4)
    print("KERNEL_OK")
</pallas_src>

<mosaic_0001>
module attributes {stable_mosaic.version = 11 : i64} {
  func.func @_lstm_dense_kernel(%arg0: memref<64x16xf32, #tpu.memory_space<vmem>>, %arg1: memref<216x256xf32, #tpu.memory_space<vmem>>, %arg2: memref<8x1xf32, #tpu.memory_space<vmem>>) attributes {dimension_semantics = [], scalar_prefetch = 0 : i64, scratch_operands = 0 : i64, tpu.core_type = #tpu.core_type<tc>} {
    %c0 = arith.constant 0 : index
    %c0_0 = arith.constant 0 : index
    %0 = vector.load %arg1[%c0, %c0_0] : memref<216x256xf32, #tpu.memory_space<vmem>>, vector<64x256xf32>
    %c64 = arith.constant 64 : index
    %c0_1 = arith.constant 0 : index
    %1 = vector.load %arg1[%c64, %c0_1] : memref<216x256xf32, #tpu.memory_space<vmem>>, vector<16x128xf32>
    %c80 = arith.constant 80 : index
    %c0_2 = arith.constant 0 : index
    %2 = vector.load %arg1[%c80, %c0_2] : memref<216x256xf32, #tpu.memory_space<vmem>>, vector<32x128xf32>
    %c112 = arith.constant 112 : index
    %c0_3 = arith.constant 0 : index
    %3 = vector.load %arg1[%c112, %c0_3] : memref<216x256xf32, #tpu.memory_space<vmem>>, vector<2x128xf32>
    %4 = vector.extract_strided_slice %3 {offsets = [0, 0], sizes = [1, 128], strides = [1, 1]} : vector<2x128xf32> to vector<1x128xf32>
    %5 = vector.extract_strided_slice %3 {offsets = [1, 0], sizes = [1, 128], strides = [1, 1]} : vector<2x128xf32> to vector<1x128xf32>
    %6 = vector.shape_cast %5 : vector<1x128xf32> to vector<1x128xf32>
    %7 = vector.broadcast %6 : vector<1x128xf32> to vector<8x128xf32>
    %c120 = arith.constant 120 : index
    %c0_4 = arith.constant 0 : index
    %8 = vector.load %arg1[%c120, %c0_4] : memref<216x256xf32, #tpu.memory_space<vmem>>, vector<32x128xf32>
    %9 = vector.extract_strided_slice %8 {offsets = [0, 0], sizes = [8, 32], strides = [1, 1]} : vector<32x128xf32> to vector<8x32xf32>
    %10 = vector.extract_strided_slice %8 {offsets = [8, 0], sizes = [8, 32], strides = [1, 1]} : vector<32x128xf32> to vector<8x32xf32>
    %11 = vector.extract_strided_slice %8 {offsets = [16, 0], sizes = [8, 32], strides = [1, 1]} : vector<32x128xf32> to vector<8x32xf32>
    %12 = vector.extract_strided_slice %8 {offsets = [24, 0], sizes = [8, 32], strides = [1, 1]} : vector<32x128xf32> to vector<8x32xf32>
    %c0_5 = arith.constant 0 : index
    %c0_6 = arith.constant 0 : index
    %13 = vector.load %arg0[%c0_5, %c0_6] : memref<64x16xf32, #tpu.memory_space<vmem>>, vector<64x16xf32>
    %cst = arith.constant dense<0.000000e+00> : vector<64x128xf32>
    %14 = tpu.matmul %13, %1, %cst {dimension_numbers = #tpu.dot_dimension_numbers<[1], [0], [0], [1], [0, 0, 1, 1], [], []>} : vector<64x16xf32>, vector<16x128xf32>, vector<64x128xf32> -> vector<64x128xf32>
    %15 = vector.broadcast %4 : vector<1x128xf32> to vector<64x128xf32>
    %16 = arith.addf %14, %15 : vector<64x128xf32>
    %17 = tpu.concatenate %9, %11 in 1 : vector<8x32xf32>, vector<8x32xf32> -> vector<8x64xf32>
    %cst_7 = arith.constant dense<0.000000e+00> : vector<8x256xf32>
    %18 = tpu.matmul %17, %0, %cst_7 {dimension_numbers = #tpu.dot_dimension_numbers<[1], [0], [0], [1], [0, 0, 1, 1], [], []>} : vector<8x64xf32>, vector<64x256xf32>, vector<8x256xf32> -> vector<8x256xf32>
    %19 = vector.extract_strided_slice %16 {offsets = [0, 0], sizes = [8, 128], strides = [1, 1]} : vector<64x128xf32> to vector<8x128xf32>
    %20 = vector.extract_strided_slice %18 {offsets = [0, 0], sizes = [8, 128], strides = [1, 1]} : vector<8x256xf32> to vector<8x128xf32>
    %21 = arith.addf %19, %20 : vector<8x128xf32>
    %22 = arith.negf %21 : vector<8x128xf32>
    %23 = math.exp %22 : vector<8x128xf32>
    %cst_8 = arith.constant 1.000000e+00 : f32
    %24 = vector.broadcast %cst_8 : f32 to vector<8x128xf32>
    %25 = arith.addf %24, %23 : vector<8x128xf32>
    %26 = arith.divf %24, %25 : vector<8x128xf32>
    %27 = math.tanh %21 : vector<8x128xf32>
    %28 = vector.extract_strided_slice %26 {offsets = [0, 0], sizes = [8, 32], strides = [1, 1]} : vector<8x128xf32> to vector<8x32xf32>
    %29 = vector.extract_strided_slice %26 {offsets = [0, 32], sizes = [8, 32], strides = [1, 1]} : vector<8x128xf32> to vector<8x32xf32>
    %30 = vector.extract_strided_slice %27 {offsets = [0, 64], sizes = [8, 32], strides = [1, 1]} : vector<8x128xf32> to vector<8x32xf32>
    %31 = vector.extract_strided_slice %26 {offsets = [0, 96], sizes = [8, 32], strides = [1, 1]} : vector<8x128xf32> to vector<8x32xf32>
    %32 = arith.mulf %29, %10 : vector<8x32xf32>
    %33 = arith.mulf %28, %30 : vector<8x32xf32>
    %34 = arith.addf %32, %33 : vector<8x32xf32>
    %35 = math.tanh %34 : vector<8x32xf32>
    %36 = arith.mulf %31, %35 : vector<8x32xf32>
    %cst_9 = arith.constant dense<0.000000e+00> : vector<8x128xf32>
    %37 = tpu.matmul %36, %2, %cst_9 {dimension_numbers = #tpu.dot_dimension_numbers<[1], [0], [0], [1], [0, 0, 1, 1], [], []>} : vector<8x32xf32>, vector<32x128xf32>, vector<8x128xf32> -> vector<8x128xf32>
    %38 = vector.extract_strided_slice %18 {offsets = [0, 128], sizes = [8, 128], strides = [1, 1]} : vector<8x256xf32> to vector<8x128xf32>
    %39 = arith.addf %37, %38 : vector<8x128xf32>
    %40 = arith.addf %39, %7 : vector<8x128xf32>
    %41 = arith.negf %40 : vector<8x128xf32>
    %42 = math.exp %41 : vector<8x128xf32>
    %cst_10 = arith.constant 1.000000e+00 : f32
    %43 = vector.broadcast %cst_10 : f32 to vector<8x128xf32>
    %44 = arith.addf %43, %42 : vector<8x128xf32>
    %45 = arith.divf %43, %44 : vector<8x128xf32>
    %46 = math.tanh %40 : vector<8x128xf32>
    %47 = vector.extract_strided_slice %45 {offsets = [0, 0], sizes = [8, 32], strides = [1, 1]} : vector<8x128xf32> to vector<8x32xf32>
    %48 = vector.extract_strided_slice %45 {offsets = [0, 32], sizes = [8, 32], strides = [1, 1]} : vector<8x128xf32> to vector<8x32xf32>
    %49 = vector.extract_strided_slice %46 {offsets = [0, 64], sizes = [8, 32], strides = [1, 1]} : vector<8x128xf32> to vector<8x32xf32>
    %50 = vector.extract_strided_slice %45 {offsets = [0, 96], sizes = [8, 32], strides = [1, 1]} : vector<8x128xf32> to vector<8x32xf32>
    %51 = arith.mulf %48, %12 : vector<8x32xf32>
    %52 = arith.mulf %47, %49 : vector<8x32xf32>
    %53 = arith.addf %51, %52 : vector<8x32xf32>
    %54 = math.tanh %53 : vector<8x32xf32>
    %55 = arith.mulf %50, %54 : vector<8x32xf32>
    %56 = tpu.concatenate %36, %55 in 1 : vector<8x32xf32>, vector<8x32xf32> -> vector<8x64xf32>
    %cst_11 = arith.constant dense<0.000000e+00> : vector<8x256xf32>
    %57 = tpu.matmul %56, %0, %cst_11 {dimension_numbers = #tpu.dot_dimension_numbers<[1], [0], [0], [1], [0, 0, 1, 1], [], []>} : vector<8x64xf32>, vector<64x256xf32>, vector<8x256xf32> -> vector<8x256xf32>
    %58 = vector.extract_strided_slice %16 {offsets = [8, 0], sizes = [8, 128], strides = [1, 1]} : vector<64x128xf32> to vector<8x128xf32>
    %59 = vector.extract_strided_slice %57 {offsets = [0, 0], sizes = [8, 128], strides = [1, 1]} : vector<8x256xf32> to vector<8x128xf32>
    %60 = arith.addf %58, %59 : vector<8x128xf32>
    %61 = arith.negf %60 : vector<8x128xf32>
    %62 = math.exp %61 : vector<8x128xf32>
    %cst_12 = arith.constant 1.000000e+00 : f32
    %63 = vector.broadcast %cst_12 : f32 to vector<8x128xf32>
    %64 = arith.addf %63, %62 : vector<8x128xf32>
    %65 = arith.divf %63, %64 : vector<8x128xf32>
    %66 = math.tanh %60 : vector<8x128xf32>
    %67 = vector.extract_strided_slice %65 {offsets = [0, 0], sizes = [8, 32], strides = [1, 1]} : vector<8x128xf32> to vector<8x32xf32>
    %68 = vector.extract_strided_slice %65 {offsets = [0, 32], sizes = [8, 32], strides = [1, 1]} : vector<8x128xf32> to vector<8x32xf32>
    %69 = vector.extract_strided_slice %66 {offsets = [0, 64], sizes = [8, 32], strides = [1, 1]} : vector<8x128xf32> to vector<8x32xf32>
    %70 = vector.extract_strided_slice %65 {offsets = [0, 96], sizes = [8, 32], strides = [1, 1]} : vector<8x128xf32> to vector<8x32xf32>
    %71 = arith.mulf %68, %34 : vector<8x32xf32>
    %72 = arith.mulf %67, %69 : vector<8x32xf32>
    %73 = arith.addf %71, %72 : vector<8x32xf32>
    %74 = math.tanh %73 : vector<8x32xf32>
    %75 = arith.mulf %70, %74 : vector<8x32xf32>
    %cst_13 = arith.constant dense<0.000000e+00> : vector<8x128xf32>
    %76 = tpu.matmul %75, %2, %cst_13 {dimension_numbers = #tpu.dot_dimension_numbers<[1], [0], [0], [1], [0, 0, 1, 1], [], []>} : vector<8x32xf32>, vector<32x128xf32>, vector<8x128xf32> -> vector<8x128xf32>
    %77 = vector.extract_strided_slice %57 {offsets = [0, 128], sizes = [8, 128], strides = [1, 1]} : vector<8x256xf32> to vector<8x128xf32>
    %78 = arith.addf %76, %77 : vector<8x128xf32>
    %79 = arith.addf %78, %7 : vector<8x128xf32>
    %80 = arith.negf %79 : vector<8x128xf32>
    %81 = math.exp %80 : vector<8x128xf32>
    %cst_14 = arith.constant 1.000000e+00 : f32
    %82 = vector.broadcast %cst_14 : f32 to vector<8x128xf32>
    %83 = arith.addf %82, %81 : vector<8x128xf32>
    %84 = arith.divf %82, %83 : vector<8x128xf32>
    %85 = math.tanh %79 : vector<8x128xf32>
    %86 = vector.extract_strided_slice %84 {offsets = [0, 0], sizes = [8, 32], strides = [1, 1]} : vector<8x128xf32> to vector<8x32xf32>
    %87 = vector.extract_strided_slice %84 {offsets = [0, 32], sizes = [8, 32], strides = [1, 1]} : vector<8x128xf32> to vector<8x32xf32>
    %88 = vector.extract_strided_slice %85 {offsets = [0, 64], sizes = [8, 32], strides = [1, 1]} : vector<8x128xf32> to vector<8x32xf32>
    %89 = vector.extract_strided_slice %84 {offsets = [0, 96], sizes = [8, 32], strides = [1, 1]} : vector<8x128xf32> to vector<8x32xf32>
    %90 = arith.mulf %87, %53 : vector<8x32xf32>
    %91 = arith.mulf %86, %88 : vector<8x32xf32>
    %92 = arith.addf %90, %91 : vector<8x32xf32>
    %93 = math.tanh %92 : vector<8x32xf32>
    %94 = arith.mulf %89, %93 : vector<8x32xf32>
    %95 = tpu.concatenate %75, %94 in 1 : vector<8x32xf32>, vector<8x32xf32> -> vector<8x64xf32>
    %cst_15 = arith.constant dense<0.000000e+00> : vector<8x256xf32>
    %96 = tpu.matmul %95, %0, %cst_15 {dimension_numbers = #tpu.dot_dimension_numbers<[1], [0], [0], [1], [0, 0, 1, 1], [], []>} : vector<8x64xf32>, vector<64x256xf32>, vector<8x256xf32> -> vector<8x256xf32>
    %97 = vector.extract_strided_slice %16 {offsets = [16, 0], sizes = [8, 128], strides = [1, 1]} : vector<64x128xf32> to vector<8x128xf32>
    %98 = vector.extract_strided_slice %96 {offsets = [0, 0], sizes = [8, 128], strides = [1, 1]} : vector<8x256xf32> to vector<8x128xf32>
    %99 = arith.addf %97, %98 : vector<8x128xf32>
    %100 = arith.negf %99 : vector<8x128xf32>
    %101 = math.exp %100 : vector<8x128xf32>
    %cst_16 = arith.constant 1.000000e+00 : f32
    %102 = vector.broadcast %cst_16 : f32 to vector<8x128xf32>
    %103 = arith.addf %102, %101 : vector<8x128xf32>
    %104 = arith.divf %102, %103 : vector<8x128xf32>
    %105 = math.tanh %99 : vector<8x128xf32>
    %106 = vector.extract_strided_slice %104 {offsets = [0, 0], sizes = [8, 32], strides = [1, 1]} : vector<8x128xf32> to vector<8x32xf32>
    %107 = vector.extract_strided_slice %104 {offsets = [0, 32], sizes = [8, 32], strides = [1, 1]} : vector<8x128xf32> to vector<8x32xf32>
    %108 = vector.extract_strided_slice %105 {offsets = [0, 64], sizes = [8, 32], strides = [1, 1]} : vector<8x128xf32> to vector<8x32xf32>
    %109 = vector.extract_strided_slice %104 {offsets = [0, 96], sizes = [8, 32], strides = [1, 1]} : vector<8x128xf32> to vector<8x32xf32>
    %110 = arith.mulf %107, %73 : vector<8x32xf32>
    %111 = arith.mulf %106, %108 : vector<8x32xf32>
    %112 = arith.addf %110, %111 : vector<8x32xf32>
    %113 = math.tanh %112 : vector<8x32xf32>
    %114 = arith.mulf %109, %113 : vector<8x32xf32>
    %cst_17 = arith.constant dense<0.000000e+00> : vector<8x128xf32>
    %115 = tpu.matmul %114, %2, %cst_17 {dimension_numbers = #tpu.dot_dimension_numbers<[1], [0], [0], [1], [0, 0, 1, 1], [], []>} : vector<8x32xf32>, vector<32x128xf32>, vector<8x128xf32> -> vector<8x128xf32>
    %116 = vector.extract_strided_slice %96 {offsets = [0, 128], sizes = [8, 128], strides = [1, 1]} : vector<8x256xf32> to vector<8x128xf32>
    %117 = arith.addf %115, %116 : vector<8x128xf32>
    %118 = arith.addf %117, %7 : vector<8x128xf32>
    %119 = arith.negf %118 : vector<8x128xf32>
    %120 = math.exp %119 : vector<8x128xf32>
    %cst_18 = arith.constant 1.000000e+00 : f32
    %121 = vector.broadcast %cst_18 : f32 to vector<8x128xf32>
    %122 = arith.addf %121, %120 : vector<8x128xf32>
    %123 = arith.divf %121, %122 : vector<8x128xf32>
    %124 = math.tanh %118 : vector<8x128xf32>
    %125 = vector.extract_strided_slice %123 {offsets = [0, 0], sizes = [8, 32], strides = [1, 1]} : vector<8x128xf32> to vector<8x32xf32>
    %126 = vector.extract_strided_slice %123 {offsets = [0, 32], sizes = [8, 32], strides = [1, 1]} : vector<8x128xf32> to vector<8x32xf32>
    %127 = vector.extract_strided_slice %124 {offsets = [0, 64], sizes = [8, 32], strides = [1, 1]} : vector<8x128xf32> to vector<8x32xf32>
    %128 = vector.extract_strided_slice %123 {offsets = [0, 96], sizes = [8, 32], strides = [1, 1]} : vector<8x128xf32> to vector<8x32xf32>
    %129 = arith.mulf %126, %92 : vector<8x32xf32>
    %130 = arith.mulf %125, %127 : vector<8x32xf32>
    %131 = arith.addf %129, %130 : vector<8x32xf32>
    %132 = math.tanh %131 : vector<8x32xf32>
    %133 = arith.mulf %128, %132 : vector<8x32xf32>
    %134 = tpu.concatenate %114, %133 in 1 : vector<8x32xf32>, vector<8x32xf32> -> vector<8x64xf32>
    %cst_19 = arith.constant dense<0.000000e+00> : vector<8x256xf32>
    %135 = tpu.matmul %134, %0, %cst_19 {dimension_numbers = #tpu.dot_dimension_numbers<[1], [0], [0], [1], [0, 0, 1, 1], [], []>} : vector<8x64xf32>, vector<64x256xf32>, vector<8x256xf32> -> vector<8x256xf32>
    %136 = vector.extract_strided_slice %16 {offsets = [24, 0], sizes = [8, 128], strides = [1, 1]} : vector<64x128xf32> to vector<8x128xf32>
    %137 = vector.extract_strided_slice %135 {offsets = [0, 0], sizes = [8, 128], strides = [1, 1]} : vector<8x256xf32> to vector<8x128xf32>
    %138 = arith.addf %136, %137 : vector<8x128xf32>
    %139 = arith.negf %138 : vector<8x128xf32>
    %140 = math.exp %139 : vector<8x128xf32>
    %cst_20 = arith.constant 1.000000e+00 : f32
    %141 = vector.broadcast %cst_20 : f32 to vector<8x128xf32>
    %142 = arith.addf %141, %140 : vector<8x128xf32>
    %143 = arith.divf %141, %142 : vector<8x128xf32>
    %144 = math.tanh %138 : vector<8x128xf32>
    %145 = vector.extract_strided_slice %143 {offsets = [0, 0], sizes = [8, 32], strides = [1, 1]} : vector<8x128xf32> to vector<8x32xf32>
    %146 = vector.extract_strided_slice %143 {offsets = [0, 32], sizes = [8, 32], strides = [1, 1]} : vector<8x128xf32> to vector<8x32xf32>
    %147 = vector.extract_strided_slice %144 {offsets = [0, 64], sizes = [8, 32], strides = [1, 1]} : vector<8x128xf32> to vector<8x32xf32>
    %148 = vector.extract_strided_slice %143 {offsets = [0, 96], sizes = [8, 32], strides = [1, 1]} : vector<8x128xf32> to vector<8x32xf32>
    %149 = arith.mulf %146, %112 : vector<8x32xf32>
    %150 = arith.mulf %145, %147 : vector<8x32xf32>
    %151 = arith.addf %149, %150 : vector<8x32xf32>
    %152 = math.tanh %151 : vector<8x32xf32>
    %153 = arith.mulf %148, %152 : vector<8x32xf32>
    %cst_21 = arith.constant dense<0.000000e+00> : vector<8x128xf32>
    %154 = tpu.matmul %153, %2, %cst_21 {dimension_numbers = #tpu.dot_dimension_numbers<[1], [0], [0], [1], [0, 0, 1, 1], [], []>} : vector<8x32xf32>, vector<32x128xf32>, vector<8x128xf32> -> vector<8x128xf32>
    %155 = vector.extract_strided_slice %135 {offsets = [0, 128], sizes = [8, 128], strides = [1, 1]} : vector<8x256xf32> to vector<8x128xf32>
    %156 = arith.addf %154, %155 : vector<8x128xf32>
    %157 = arith.addf %156, %7 : vector<8x128xf32>
    %158 = arith.negf %157 : vector<8x128xf32>
    %159 = math.exp %158 : vector<8x128xf32>
    %cst_22 = arith.constant 1.000000e+00 : f32
    %160 = vector.broadcast %cst_22 : f32 to vector<8x128xf32>
    %161 = arith.addf %160, %159 : vector<8x128xf32>
    %162 = arith.divf %160, %161 : vector<8x128xf32>
    %163 = math.tanh %157 : vector<8x128xf32>
    %164 = vector.extract_strided_slice %162 {offsets = [0, 0], sizes = [8, 32], strides = [1, 1]} : vector<8x128xf32> to vector<8x32xf32>
    %165 = vector.extract_strided_slice %162 {offsets = [0, 32], sizes = [8, 32], strides = [1, 1]} : vector<8x128xf32> to vector<8x32xf32>
    %166 = vector.extract_strided_slice %163 {offsets = [0, 64], sizes = [8, 32], strides = [1, 1]} : vector<8x128xf32> to vector<8x32xf32>
    %167 = vector.extract_strided_slice %162 {offsets = [0, 96], sizes = [8, 32], strides = [1, 1]} : vector<8x128xf32> to vector<8x32xf32>
    %168 = arith.mulf %165, %131 : vector<8x32xf32>
    %169 = arith.mulf %164, %166 : vector<8x32xf32>
    %170 = arith.addf %168, %169 : vector<8x32xf32>
    %171 = math.tanh %170 : vector<8x32xf32>
    %172 = arith.mulf %167, %171 : vector<8x32xf32>
    %173 = tpu.concatenate %153, %172 in 1 : vector<8x32xf32>, vector<8x32xf32> -> vector<8x64xf32>
    %cst_23 = arith.constant dense<0.000000e+00> : vector<8x256xf32>
    %174 = tpu.matmul %173, %0, %cst_23 {dimension_numbers = #tpu.dot_dimension_numbers<[1], [0], [0], [1], [0, 0, 1, 1], [], []>} : vector<8x64xf32>, vector<64x256xf32>, vector<8x256xf32> -> vector<8x256xf32>
    %175 = vector.extract_strided_slice %16 {offsets = [32, 0], sizes = [8, 128], strides = [1, 1]} : vector<64x128xf32> to vector<8x128xf32>
    %176 = vector.extract_strided_slice %174 {offsets = [0, 0], sizes = [8, 128], strides = [1, 1]} : vector<8x256xf32> to vector<8x128xf32>
    %177 = arith.addf %175, %176 : vector<8x128xf32>
    %178 = arith.negf %177 : vector<8x128xf32>
    %179 = math.exp %178 : vector<8x128xf32>
    %cst_24 = arith.constant 1.000000e+00 : f32
    %180 = vector.broadcast %cst_24 : f32 to vector<8x128xf32>
    %181 = arith.addf %180, %179 : vector<8x128xf32>
    %182 = arith.divf %180, %181 : vector<8x128xf32>
    %183 = math.tanh %177 : vector<8x128xf32>
    %184 = vector.extract_strided_slice %182 {offsets = [0, 0], sizes = [8, 32], strides = [1, 1]} : vector<8x128xf32> to vector<8x32xf32>
    %185 = vector.extract_strided_slice %182 {offsets = [0, 32], sizes = [8, 32], strides = [1, 1]} : vector<8x128xf32> to vector<8x32xf32>
    %186 = vector.extract_strided_slice %183 {offsets = [0, 64], sizes = [8, 32], strides = [1, 1]} : vector<8x128xf32> to vector<8x32xf32>
    %187 = vector.extract_strided_slice %182 {offsets = [0, 96], sizes = [8, 32], strides = [1, 1]} : vector<8x128xf32> to vector<8x32xf32>
    %188 = arith.mulf %185, %151 : vector<8x32xf32>
    %189 = arith.mulf %184, %186 : vector<8x32xf32>
    %190 = arith.addf %188, %189 : vector<8x32xf32>
    %191 = math.tanh %190 : vector<8x32xf32>
    %192 = arith.mulf %187, %191 : vector<8x32xf32>
    %cst_25 = arith.constant dense<0.000000e+00> : vector<8x128xf32>
    %193 = tpu.matmul %192, %2, %cst_25 {dimension_numbers = #tpu.dot_dimension_numbers<[1], [0], [0], [1], [0, 0, 1, 1], [], []>} : vector<8x32xf32>, vector<32x128xf32>, vector<8x128xf32> -> vector<8x128xf32>
    %194 = vector.extract_strided_slice %174 {offsets = [0, 128], sizes = [8, 128], strides = [1, 1]} : vector<8x256xf32> to vector<8x128xf32>
    %195 = arith.addf %193, %194 : vector<8x128xf32>
    %196 = arith.addf %195, %7 : vector<8x128xf32>
    %197 = arith.negf %196 : vector<8x128xf32>
    %198 = math.exp %197 : vector<8x128xf32>
    %cst_26 = arith.constant 1.000000e+00 : f32
    %199 = vector.broadcast %cst_26 : f32 to vector<8x128xf32>
    %200 = arith.addf %199, %198 : vector<8x128xf32>
    %201 = arith.divf %199, %200 : vector<8x128xf32>
    %202 = math.tanh %196 : vector<8x128xf32>
    %203 = vector.extract_strided_slice %201 {offsets = [0, 0], sizes = [8, 32], strides = [1, 1]} : vector<8x128xf32> to vector<8x32xf32>
    %204 = vector.extract_strided_slice %201 {offsets = [0, 32], sizes = [8, 32], strides = [1, 1]} : vector<8x128xf32> to vector<8x32xf32>
    %205 = vector.extract_strided_slice %202 {offsets = [0, 64], sizes = [8, 32], strides = [1, 1]} : vector<8x128xf32> to vector<8x32xf32>
    %206 = vector.extract_strided_slice %201 {offsets = [0, 96], sizes = [8, 32], strides = [1, 1]} : vector<8x128xf32> to vector<8x32xf32>
    %207 = arith.mulf %204, %170 : vector<8x32xf32>
    %208 = arith.mulf %203, %205 : vector<8x32xf32>
    %209 = arith.addf %207, %208 : vector<8x32xf32>
    %210 = math.tanh %209 : vector<8x32xf32>
    %211 = arith.mulf %206, %210 : vector<8x32xf32>
    %212 = tpu.concatenate %192, %211 in 1 : vector<8x32xf32>, vector<8x32xf32> -> vector<8x64xf32>
    %cst_27 = arith.constant dense<0.000000e+00> : vector<8x256xf32>
    %213 = tpu.matmul %212, %0, %cst_27 {dimension_numbers = #tpu.dot_dimension_numbers<[1], [0], [0], [1], [0, 0, 1, 1], [], []>} : vector<8x64xf32>, vector<64x256xf32>, vector<8x256xf32> -> vector<8x256xf32>
    %214 = vector.extract_strided_slice %16 {offsets = [40, 0], sizes = [8, 128], strides = [1, 1]} : vector<64x128xf32> to vector<8x128xf32>
    %215 = vector.extract_strided_slice %213 {offsets = [0, 0], sizes = [8, 128], strides = [1, 1]} : vector<8x256xf32> to vector<8x128xf32>
    %216 = arith.addf %214, %215 : vector<8x128xf32>
    %217 = arith.negf %216 : vector<8x128xf32>
    %218 = math.exp %217 : vector<8x128xf32>
    %cst_28 = arith.constant 1.000000e+00 : f32
    %219 = vector.broadcast %cst_28 : f32 to vector<8x128xf32>
    %220 = arith.addf %219, %218 : vector<8x128xf32>
    %221 = arith.divf %219, %220 : vector<8x128xf32>
    %222 = math.tanh %216 : vector<8x128xf32>
    %223 = vector.extract_strided_slice %221 {offsets = [0, 0], sizes = [8, 32], strides = [1, 1]} : vector<8x128xf32> to vector<8x32xf32>
    %224 = vector.extract_strided_slice %221 {offsets = [0, 32], sizes = [8, 32], strides = [1, 1]} : vector<8x128xf32> to vector<8x32xf32>
    %225 = vector.extract_strided_slice %222 {offsets = [0, 64], sizes = [8, 32], strides = [1, 1]} : vector<8x128xf32> to vector<8x32xf32>
    %226 = vector.extract_strided_slice %221 {offsets = [0, 96], sizes = [8, 32], strides = [1, 1]} : vector<8x128xf32> to vector<8x32xf32>
    %227 = arith.mulf %224, %190 : vector<8x32xf32>
    %228 = arith.mulf %223, %225 : vector<8x32xf32>
    %229 = arith.addf %227, %228 : vector<8x32xf32>
    %230 = math.tanh %229 : vector<8x32xf32>
    %231 = arith.mulf %226, %230 : vector<8x32xf32>
    %cst_29 = arith.constant dense<0.000000e+00> : vector<8x128xf32>
    %232 = tpu.matmul %231, %2, %cst_29 {dimension_numbers = #tpu.dot_dimension_numbers<[1], [0], [0], [1], [0, 0, 1, 1], [], []>} : vector<8x32xf32>, vector<32x128xf32>, vector<8x128xf32> -> vector<8x128xf32>
    %233 = vector.extract_strided_slice %213 {offsets = [0, 128], sizes = [8, 128], strides = [1, 1]} : vector<8x256xf32> to vector<8x128xf32>
    %234 = arith.addf %232, %233 : vector<8x128xf32>
    %235 = arith.addf %234, %7 : vector<8x128xf32>
    %236 = arith.negf %235 : vector<8x128xf32>
    %237 = math.exp %236 : vector<8x128xf32>
    %cst_30 = arith.constant 1.000000e+00 : f32
    %238 = vector.broadcast %cst_30 : f32 to vector<8x128xf32>
    %239 = arith.addf %238, %237 : vector<8x128xf32>
    %240 = arith.divf %238, %239 : vector<8x128xf32>
    %241 = math.tanh %235 : vector<8x128xf32>
    %242 = vector.extract_strided_slice %240 {offsets = [0, 0], sizes = [8, 32], strides = [1, 1]} : vector<8x128xf32> to vector<8x32xf32>
    %243 = vector.extract_strided_slice %240 {offsets = [0, 32], sizes = [8, 32], strides = [1, 1]} : vector<8x128xf32> to vector<8x32xf32>
    %244 = vector.extract_strided_slice %241 {offsets = [0, 64], sizes = [8, 32], strides = [1, 1]} : vector<8x128xf32> to vector<8x32xf32>
    %245 = vector.extract_strided_slice %240 {offsets = [0, 96], sizes = [8, 32], strides = [1, 1]} : vector<8x128xf32> to vector<8x32xf32>
    %246 = arith.mulf %243, %209 : vector<8x32xf32>
    %247 = arith.mulf %242, %244 : vector<8x32xf32>
    %248 = arith.addf %246, %247 : vector<8x32xf32>
    %249 = math.tanh %248 : vector<8x32xf32>
    %250 = arith.mulf %245, %249 : vector<8x32xf32>
    %251 = tpu.concatenate %231, %250 in 1 : vector<8x32xf32>, vector<8x32xf32> -> vector<8x64xf32>
    %cst_31 = arith.constant dense<0.000000e+00> : vector<8x256xf32>
    %252 = tpu.matmul %251, %0, %cst_31 {dimension_numbers = #tpu.dot_dimension_numbers<[1], [0], [0], [1], [0, 0, 1, 1], [], []>} : vector<8x64xf32>, vector<64x256xf32>, vector<8x256xf32> -> vector<8x256xf32>
    %253 = vector.extract_strided_slice %16 {offsets = [48, 0], sizes = [8, 128], strides = [1, 1]} : vector<64x128xf32> to vector<8x128xf32>
    %254 = vector.extract_strided_slice %252 {offsets = [0, 0], sizes = [8, 128], strides = [1, 1]} : vector<8x256xf32> to vector<8x128xf32>
    %255 = arith.addf %253, %254 : vector<8x128xf32>
    %256 = arith.negf %255 : vector<8x128xf32>
    %257 = math.exp %256 : vector<8x128xf32>
    %cst_32 = arith.constant 1.000000e+00 : f32
    %258 = vector.broadcast %cst_32 : f32 to vector<8x128xf32>
    %259 = arith.addf %258, %257 : vector<8x128xf32>
    %260 = arith.divf %258, %259 : vector<8x128xf32>
    %261 = math.tanh %255 : vector<8x128xf32>
    %262 = vector.extract_strided_slice %260 {offsets = [0, 0], sizes = [8, 32], strides = [1, 1]} : vector<8x128xf32> to vector<8x32xf32>
    %263 = vector.extract_strided_slice %260 {offsets = [0, 32], sizes = [8, 32], strides = [1, 1]} : vector<8x128xf32> to vector<8x32xf32>
    %264 = vector.extract_strided_slice %261 {offsets = [0, 64], sizes = [8, 32], strides = [1, 1]} : vector<8x128xf32> to vector<8x32xf32>
    %265 = vector.extract_strided_slice %260 {offsets = [0, 96], sizes = [8, 32], strides = [1, 1]} : vector<8x128xf32> to vector<8x32xf32>
    %266 = arith.mulf %263, %229 : vector<8x32xf32>
    %267 = arith.mulf %262, %264 : vector<8x32xf32>
    %268 = arith.addf %266, %267 : vector<8x32xf32>
    %269 = math.tanh %268 : vector<8x32xf32>
    %270 = arith.mulf %265, %269 : vector<8x32xf32>
    %cst_33 = arith.constant dense<0.000000e+00> : vector<8x128xf32>
    %271 = tpu.matmul %270, %2, %cst_33 {dimension_numbers = #tpu.dot_dimension_numbers<[1], [0], [0], [1], [0, 0, 1, 1], [], []>} : vector<8x32xf32>, vector<32x128xf32>, vector<8x128xf32> -> vector<8x128xf32>
    %272 = vector.extract_strided_slice %252 {offsets = [0, 128], sizes = [8, 128], strides = [1, 1]} : vector<8x256xf32> to vector<8x128xf32>
    %273 = arith.addf %271, %272 : vector<8x128xf32>
    %274 = arith.addf %273, %7 : vector<8x128xf32>
    %275 = arith.negf %274 : vector<8x128xf32>
    %276 = math.exp %275 : vector<8x128xf32>
    %cst_34 = arith.constant 1.000000e+00 : f32
    %277 = vector.broadcast %cst_34 : f32 to vector<8x128xf32>
    %278 = arith.addf %277, %276 : vector<8x128xf32>
    %279 = arith.divf %277, %278 : vector<8x128xf32>
    %280 = math.tanh %274 : vector<8x128xf32>
    %281 = vector.extract_strided_slice %279 {offsets = [0, 0], sizes = [8, 32], strides = [1, 1]} : vector<8x128xf32> to vector<8x32xf32>
    %282 = vector.extract_strided_slice %279 {offsets = [0, 32], sizes = [8, 32], strides = [1, 1]} : vector<8x128xf32> to vector<8x32xf32>
    %283 = vector.extract_strided_slice %280 {offsets = [0, 64], sizes = [8, 32], strides = [1, 1]} : vector<8x128xf32> to vector<8x32xf32>
    %284 = vector.extract_strided_slice %279 {offsets = [0, 96], sizes = [8, 32], strides = [1, 1]} : vector<8x128xf32> to vector<8x32xf32>
    %285 = arith.mulf %282, %248 : vector<8x32xf32>
    %286 = arith.mulf %281, %283 : vector<8x32xf32>
    %287 = arith.addf %285, %286 : vector<8x32xf32>
    %288 = math.tanh %287 : vector<8x32xf32>
    %289 = arith.mulf %284, %288 : vector<8x32xf32>
    %290 = tpu.concatenate %270, %289 in 1 : vector<8x32xf32>, vector<8x32xf32> -> vector<8x64xf32>
    %cst_35 = arith.constant dense<0.000000e+00> : vector<8x256xf32>
    %291 = tpu.matmul %290, %0, %cst_35 {dimension_numbers = #tpu.dot_dimension_numbers<[1], [0], [0], [1], [0, 0, 1, 1], [], []>} : vector<8x64xf32>, vector<64x256xf32>, vector<8x256xf32> -> vector<8x256xf32>
    %292 = vector.extract_strided_slice %16 {offsets = [56, 0], sizes = [8, 128], strides = [1, 1]} : vector<64x128xf32> to vector<8x128xf32>
    %293 = vector.extract_strided_slice %291 {offsets = [0, 0], sizes = [8, 128], strides = [1, 1]} : vector<8x256xf32> to vector<8x128xf32>
    %294 = arith.addf %292, %293 : vector<8x128xf32>
    %295 = arith.negf %294 : vector<8x128xf32>
    %296 = math.exp %295 : vector<8x128xf32>
    %cst_36 = arith.constant 1.000000e+00 : f32
    %297 = vector.broadcast %cst_36 : f32 to vector<8x128xf32>
    %298 = arith.addf %297, %296 : vector<8x128xf32>
    %299 = arith.divf %297, %298 : vector<8x128xf32>
    %300 = math.tanh %294 : vector<8x128xf32>
    %301 = vector.extract_strided_slice %299 {offsets = [0, 0], sizes = [8, 32], strides = [1, 1]} : vector<8x128xf32> to vector<8x32xf32>
    %302 = vector.extract_strided_slice %299 {offsets = [0, 32], sizes = [8, 32], strides = [1, 1]} : vector<8x128xf32> to vector<8x32xf32>
    %303 = vector.extract_strided_slice %300 {offsets = [0, 64], sizes = [8, 32], strides = [1, 1]} : vector<8x128xf32> to vector<8x32xf32>
    %304 = vector.extract_strided_slice %299 {offsets = [0, 96], sizes = [8, 32], strides = [1, 1]} : vector<8x128xf32> to vector<8x32xf32>
    %305 = arith.mulf %302, %268 : vector<8x32xf32>
    %306 = arith.mulf %301, %303 : vector<8x32xf32>
    %307 = arith.addf %305, %306 : vector<8x32xf32>
    %308 = math.tanh %307 : vector<8x32xf32>
    %309 = arith.mulf %304, %308 : vector<8x32xf32>
    %cst_37 = arith.constant dense<0.000000e+00> : vector<8x128xf32>
    %310 = tpu.matmul %309, %2, %cst_37 {dimension_numbers = #tpu.dot_dimension_numbers<[1], [0], [0], [1], [0, 0, 1, 1], [], []>} : vector<8x32xf32>, vector<32x128xf32>, vector<8x128xf32> -> vector<8x128xf32>
    %311 = vector.extract_strided_slice %291 {offsets = [0, 128], sizes = [8, 128], strides = [1, 1]} : vector<8x256xf32> to vector<8x128xf32>
    %312 = arith.addf %310, %311 : vector<8x128xf32>
    %313 = arith.addf %312, %7 : vector<8x128xf32>
    %314 = arith.negf %313 : vector<8x128xf32>
    %315 = math.exp %314 : vector<8x128xf32>
    %cst_38 = arith.constant 1.000000e+00 : f32
    %316 = vector.broadcast %cst_38 : f32 to vector<8x128xf32>
    %317 = arith.addf %316, %315 : vector<8x128xf32>
    %318 = arith.divf %316, %317 : vector<8x128xf32>
    %319 = math.tanh %313 : vector<8x128xf32>
    %320 = vector.extract_strided_slice %318 {offsets = [0, 0], sizes = [8, 32], strides = [1, 1]} : vector<8x128xf32> to vector<8x32xf32>
    %321 = vector.extract_strided_slice %318 {offsets = [0, 32], sizes = [8, 32], strides = [1, 1]} : vector<8x128xf32> to vector<8x32xf32>
    %322 = vector.extract_strided_slice %319 {offsets = [0, 64], sizes = [8, 32], strides = [1, 1]} : vector<8x128xf32> to vector<8x32xf32>
    %323 = vector.extract_strided_slice %318 {offsets = [0, 96], sizes = [8, 32], strides = [1, 1]} : vector<8x128xf32> to vector<8x32xf32>
    %324 = arith.mulf %321, %287 : vector<8x32xf32>
    %325 = arith.mulf %320, %322 : vector<8x32xf32>
    %326 = arith.addf %324, %325 : vector<8x32xf32>
    %327 = math.tanh %326 : vector<8x32xf32>
    %328 = arith.mulf %323, %327 : vector<8x32xf32>
    %c152 = arith.constant 152 : index
    %c0_39 = arith.constant 0 : index
    %329 = vector.load %arg1[%c152, %c0_39] : memref<216x256xf32, #tpu.memory_space<vmem>>, vector<64x128xf32>
    %330 = vector.extract_strided_slice %329 {offsets = [0, 0], sizes = [32, 12], strides = [1, 1]} : vector<64x128xf32> to vector<32x12xf32>
    %331 = vector.extract_strided_slice %329 {offsets = [32, 0], sizes = [12, 6], strides = [1, 1]} : vector<64x128xf32> to vector<12x6xf32>
    %332 = vector.extract_strided_slice %329 {offsets = [48, 0], sizes = [6, 1], strides = [1, 1]} : vector<64x128xf32> to vector<6x1xf32>
    %333 = vector.extract_strided_slice %329 {offsets = [56, 0], sizes = [1, 12], strides = [1, 1]} : vector<64x128xf32> to vector<1x12xf32>
    %334 = vector.extract_strided_slice %329 {offsets = [57, 0], sizes = [1, 6], strides = [1, 1]} : vector<64x128xf32> to vector<1x6xf32>
    %335 = vector.extract_strided_slice %329 {offsets = [58, 0], sizes = [1, 1], strides = [1, 1]} : vector<64x128xf32> to vector<1x1xf32>
    %cst_40 = arith.constant dense<0.000000e+00> : vector<8x12xf32>
    %336 = tpu.matmul %328, %330, %cst_40 {dimension_numbers = #tpu.dot_dimension_numbers<[1], [0], [0], [1], [0, 0, 1, 1], [], []>} : vector<8x32xf32>, vector<32x12xf32>, vector<8x12xf32> -> vector<8x12xf32>
    %337 = vector.broadcast %333 : vector<1x12xf32> to vector<8x12xf32>
    %338 = arith.addf %336, %337 : vector<8x12xf32>
    %cst_41 = arith.constant 0.000000e+00 : f32
    %339 = vector.broadcast %cst_41 : f32 to vector<8x12xf32>
    %340 = arith.maximumf %338, %339 : vector<8x12xf32>
    %cst_42 = arith.constant dense<0.000000e+00> : vector<8x6xf32>
    %341 = tpu.matmul %340, %331, %cst_42 {dimension_numbers = #tpu.dot_dimension_numbers<[1], [0], [0], [1], [0, 0, 1, 1], [], []>} : vector<8x12xf32>, vector<12x6xf32>, vector<8x6xf32> -> vector<8x6xf32>
    %342 = vector.broadcast %334 : vector<1x6xf32> to vector<8x6xf32>
    %343 = arith.addf %341, %342 : vector<8x6xf32>
    %cst_43 = arith.constant 0.000000e+00 : f32
    %344 = vector.broadcast %cst_43 : f32 to vector<8x6xf32>
    %345 = arith.maximumf %343, %344 : vector<8x6xf32>
    %cst_44 = arith.constant dense<0.000000e+00> : vector<8x1xf32>
    %346 = tpu.matmul %345, %332, %cst_44 {dimension_numbers = #tpu.dot_dimension_numbers<[1], [0], [0], [1], [0, 0, 1, 1], [], []>} : vector<8x6xf32>, vector<6x1xf32>, vector<8x1xf32> -> vector<8x1xf32>
    %347 = vector.broadcast %335 : vector<1x1xf32> to vector<8x1xf32>
    %348 = arith.addf %346, %347 : vector<8x1xf32>
    %c0_45 = arith.constant 0 : index
    %c0_46 = arith.constant 0 : index
    %349 = vector.load %arg2[%c0_45, %c0_46] : memref<8x1xf32, #tpu.memory_space<vmem>>, vector<8x1xf32>
    tpu.vector_store %arg2[%c0_45, %c0_46], %348 {strides = array<i32>} : memref<8x1xf32, #tpu.memory_space<vmem>>, vector<8x1xf32>,
    return
  }
}

</mosaic_0001>

<bundles_post_ra>
// kernel: lstm_forward.1
= control target key start
LH: loop header
LB: loop body
LE: loop exit
PB: predicated region body
PF: predicated region fallthrough
CT: control target
= control target key end

     0   :  { %7 = vsyncpa [#allocation3], 0  ;;  %s2690_s9 = smov [#allocation2]   ;;  %s3116_s0 = inlined_call_operand.vmem [shape: f32[64,16], index: 0, kind: input, shape index: {}]   ;;  %s3117_s1 = inlined_call_operand.hbm [shape: f32[216,256], index: 1, kind: input, shape index: {}]   ;;  %s3118_s2 = inlined_call_operand.vmem [shape: f32[8,1], index: 2, kind: output, shape index: {}]  }
   0x1   :  { %s15_s10 = sshll.u32 %s2690_s9, 4  ;;  %s2666_s13 = scalar_lea.hbm %s3117_s1, 6912  ;;  %s16_s10 = int_to_ptr.vmem [resolvable:$true] %s15_s10 }
   0x2   :  { %p2667_p0 = scmp.ne.s32.totalorder %s3117_s1, %s2666_s13  ;;  %p2670_p1 = scmp.lt.u32.totalorder %s2666_s13, %s3117_s1 }
   0x4   :  { %p2672_p2 = pnand %p2670_p1, %p2667_p0 }
   0x6   :  { %2675 = shalt.err (!%p2672_p2)
}
   0x7   :  { %s2676_s18 = scalar_lea.vmem %s16_s10, 6912  ;;  %p2681_p4 = scmp.lt.s32.totalorder %s16_s10, %s16_s10 }
   0x8   :  { %p2677_p3 = scmp.ne.s32.totalorder %s16_s10, %s2676_s18  ;;  %p2682_p5 = scmp.lt.s32.totalorder %s2676_s18, %s2676_s18 }
   0xa   :  { %p2683_p6 = por %p2682_p5, %p2681_p4 }
   0xc   :  { %p2684_p7 = pnand %p2683_p6, %p2677_p3 }
   0xe   :  { %2687 = shalt.err (!%p2684_p7)
}
   0xf   :  { %s2691_s19 = smov 256   ;;  %s2692_s20 = smov 16  }
  0x10   :  { %21 = dma.hbm_to_vmem [thread:$0]  %s3117_s1, 6912, %s16_s10, [#allocation3], %s2691_s19, %s2691_s19, %s2692_s20  }
  0x11   :  { %2688 = dma.done.wait [#allocation3], 6912  }
  0x12   :  { %2689 = vsyncadd [#allocation3], 4294960384  ;;  %v2693_v0 = vmov 0.0   ;;  %v54_v1 = vld [vmem:[#allocation2 + $0x110] sm:$0xff]  ;;  %v26_v2 = vld [vmem:[#allocation2 + $0x8] sm:$0xff]  ;;  %s2694_s23 = smov 32   ;;  %v48_v37 = vlaneseq }
  0x13   :  { %272 = vmatprep.mubr.f32.mxu1 %v2693_v0  ;;  %v28_v3 = vld [vmem:[#allocation2 + $0x18] sm:$0xff]  ;;  %199 = vrot.lane.b32.xlu0 %v54_v1, %s2694_s23  ;;  %v25_v5 = vld [vmem:[#allocation2] sm:$0xff]  ;;  %v27_v6 = vld [vmem:[#allocation2 + $0x10] sm:$0xff]  ;;  %vm68_vm0 = vcmask 130048   ;;  %vm202_vm1 = vcmask 261120   ;;  %vm204_vm2 = vcmask 523264  }
  0x14   :  { %v2728_v4 = vpack.c.bf16 %v28_v3, %v26_v2  ;;  %v30_v7 = vld [vmem:[#allocation2 + $0x28] sm:$0xff]  ;;  %v2730_v8 = vpack.c.bf16 %v27_v6, %v25_v5  ;;  %v32_v9 = vld [vmem:[#allocation2 + $0x38] sm:$0xff]  ;;  %v29_v10 = vld [vmem:[#allocation2 + $0x20] sm:$0xff]  ;;  %v2774_v38 = vshrl.u32 %v48_v37, 7  ;;  %s2695_s27 = smov 64   ;;  %v2696_v60 = vmov 0.0|0.0  }
  0x15   :  { %v31_v11 = vld [vmem:[#allocation2 + $0x30] sm:$0xff]  ;;  %v2733_v12 = vpack.c.bf16 %v32_v9, %v30_v7  ;;  %v41_v13 = vld [vmem:[#allocation2 + $0x80] sm:$0xff]  ;;  %v34_v15 = vld [vmem:[#allocation2 + $0x48] sm:$0xff]  ;;  %vm2697_vm3 = vmmov 0   ;;  %vm1943_vm4 = vcmask 1043456   ;;  %vm2698_vm5 = vmmov 1  }
  0x16   :  { %2344 = vmatprep.subr.bf16.mxu1 %v2728_v4  ;;  %v42_v14 = vld [vmem:[#allocation2 + $0x90] sm:$0xff]  ;;  %v2736_v16 = vpack.c.bf16 %v31_v11, %v29_v10  ;;  %v36_v18 = vld [vmem:[#allocation2 + $0x58] sm:$0xff]  ;;  %v33_v20 = vld [vmem:[#allocation2 + $0x40] sm:$0xff]  ;;  %v66_v39 = vsub.s32 0, %v2774_v38  ;;  %vm1939_vm7 = vcmask 97280   ;;  %vm2026_vm8 = vcmask 1045504  }
  0x17   :  { %2346 = vmatpush1.bf16.msra.mxu1 %v2730_v8  ;;  %v2339_v17 = vpack.c.bf16 %v42_v14, %v41_v13  ;;  %v2739_v19 = vpack.c.bf16 %v36_v18, %v34_v15  ;;  %v35_v21 = vld [vmem:[#allocation2 + $0x50] sm:$0xff]  ;;  %v56_v22 = vld [vmem:[%s3116_s0] sm:$0xff]  ;;  %v38_v23 = vld [vmem:[#allocation2 + $0x68] sm:$0xff]  ;;  %vm2022_vm9 = vcmask 48128   ;;  %vm2100_vm10 = vcmask 7168  }
  0x18   :  { %2348 = vmatprep.subr.bf16.mxu1 %v2733_v12  ;;  %2216 = vmatprep.mubr.msk.f32.mxu0 %vm68_vm0, %v56_v22  ;;  %v40_v24 = vld [vmem:[#allocation2 + $0x78] sm:$0xff]  ;;  %v57_v25 = vld [vmem:[%s3116_s0 + $0x8] sm:$0xff]  ;;  %v53_v26 = vld [vmem:[#allocation2 + $0x100] sm:$0xff]  ;;  %v2749_v27 = vpack.c.bf16 %v35_v21, %v33_v20 }
  0x19   :  { %2340 = vmatprep.subr.bf16.mxu0 %v2339_v17  ;;  %288 = vrot.lane.b32.xlu1 %v53_v26, %s2694_s23  ;;  %v2753_v28 = vpack.c.bf16 %v40_v24, %v38_v23  ;;  %v37_v29 = vld [vmem:[#allocation2 + $0x60] sm:$0xff]  ;;  %v39_v30 = vld [vmem:[#allocation2 + $0x70] sm:$0xff]  ;;  %v59_v62 = vld [vmem:[%s3116_s0 + $0x18] sm:$0xff]  ;;  %v50_v23 = vsub.s32 1, %v2774_v38 }
  0x1a   :  { %2342 = vmatpush3.bf16.msra.mxu0 %v2339_v17  ;;  %v2757_v31 = vpack.c.bf16 %v39_v30, %v37_v29  ;;  %v52_v32 = vld [vmem:[#allocation2 + $0xf0] sm:$0xff]  ;;  %v2777_v40 = vld [vmem:[#allocation2 + $0xe0] sm:$0x3]  ;;  %v61_v3 = vld [vmem:[%s3116_s0 + $0x28] sm:$0xff] }
  0x1b   :  { %2350 = vmatpush1.bf16.msra.mxu1 %v2736_v16  ;;  %v2782_v41 = vrot.slane %v2777_v40, %v66_v39  ;;  %v43_v57 = vld [vmem:[#allocation2 + $0xa0] sm:$0xff]  ;;  %v44_v58 = vld [vmem:[#allocation2 + $0xb0] sm:$0xff]  ;;  %2359 = vmatprep.subr.bf16.mxu0 %v2696_v60  ;;  %v63_v7 = vld [vmem:[%s3116_s0 + $0x38] sm:$0xff]  ;;  %v2854_v24 = vrot.slane %v2777_v40, %v50_v23 }
  0x1c   :  { %2352 = vmatprep.subr.bf16.mxu1 %v2739_v19  ;;  %v58_v59 = vld [vmem:[%s3116_s0 + $0x10] sm:$0xff]  ;;  %v2796_v61 = vpack.c.bf16 %v44_v58, %v43_v57  ;;  %v60_v63 = vld [vmem:[%s3116_s0 + $0x20] sm:$0xff]  ;;  %vm2527_vm6 = vmpackc.low %vm1943_vm4, %vm2698_vm5 }
  0x1d   :  { %2217 = vmatmul.mubr.msk.f32.vlgmr.msra.gmra.mrb[0].mxu0 %vm68_vm0, %v57_v25  ;;  %v45_v1 = vld [vmem:[#allocation2 + $0xc0] sm:$0xff]  ;;  %v46_v2 = vld [vmem:[#allocation2 + $0xd0] sm:$0xff] }
  0x1e   :  { %2219 = vmatprep.mubr.msk.f32.mxu0 %vm68_vm0, %v58_v59  ;;  %2361 = vmatpush3.bf16.msra.mxu0 %v2796_v61  ;;  %v2812_v5 = vpack.c.bf16 %v46_v2, %v45_v1  ;;  %v62_v6 = vld [vmem:[%s3116_s0 + $0x30] sm:$0xff]  ;;  %v55_v13 = vld [vmem:[#allocation2 + $0x120] sm:$0xff] }
  0x1f   :  { %2354 = vmatpush1.bf16.msra.mxu1 %v2749_v27  ;;  %2362 = vmatprep.subr.bf16.mxu0 %v2696_v60 }
  0x20   :  { %2356 = vmatprep.subr.bf16.mxu1 %v2753_v28 }
  0x21   :  { %2220 = vmatmul.mubr.msk.f32.gmra.mrb[2].mxu0 %vm68_vm0, %v59_v62 }
  0x22   :  { %2222 = vmatprep.mubr.msk.f32.mxu0 %vm68_vm0, %v60_v63  ;;  %2364 = vmatpush3.bf16.msra.mxu0 %v2812_v5 }
  0x23   :  { %2358 = vmatpush1.bf16.msra.mxu1 %v2757_v31  ;;  %2381 = vmatprep.subr.bf16.mxu0 %v2696_v60 }
  0x24   :  { %2366 = vmatprep.subr.bf16.mxu1 %v2728_v4 }
  0x25   :  { %2223 = vmatmul.mubr.msk.f32.gmra.mrb[4].mxu0 %vm68_vm0, %v61_v3 }
  0x26   :  { %2225 = vmatprep.mubr.msk.f32.mxu0 %vm68_vm0, %v62_v6 }
  0x29   :  { %2226 = vmatmul.mubr.msk.f32.gmra.mrb[6].mxu0 %vm68_vm0, %v63_v7 }
  0x2a   :  { %2236 = vmatprep.mubr.msk.f32.mxu0 %vm2697_vm3, %v2693_v0 }
  0x85   :  { %v200_v33 = vpop.permute.xlu0 %199 }
  0x86   :  { %v203_v34 = vsel %vm202_vm1, %v52_v32, %v200_v33 }
  0x87   :  { %2115 = vmatmul.mubr.msk.f32.vlgmr.msra.gmra.mrb[0].mxu1 %vm204_vm2, %v203_v34 }
  0x88   :  { %2368 = vmatpush1.bf16.msra.mxu1 %v2730_v8  ;;  %485 = vmatprep.mubr.f32.mxu1 %v2693_v0 }
  0x89   :  { %2370 = vmatprep.subr.bf16.mxu1 %v2733_v12 }
  0x8b   :  { %v289_v53 = vpop.permute.xlu1 %288 }
  0x8c   :  { %2372 = vmatpush1.bf16.msra.mxu1 %v2736_v16 }
  0x8d   :  { %2374 = vmatprep.subr.bf16.mxu1 %v2739_v19 }
  0x90   :  { %2376 = vmatpush1.bf16.msra.mxu1 %v2749_v27 }
  0x91   :  { %2378 = vmatprep.subr.bf16.mxu1 %v2753_v28 }
  0x94   :  { %2380 = vmatpush1.bf16.msra.mxu1 %v2757_v31 }
  0x95   :  { %2403 = vmatprep.subr.bf16.mxu1 %v2696_v60 }
  0xf0   :  { %v2772_v35 = vpop.f32.mrb[0].mxu0 }
  0xf1   :  { %v159_v36 = vpop.f32.mrb[1].mxu0 }
  0xf2   :  { %v160_v42 = vadd.f32 %v159_v36, %v2782_v41 }
  0xf4   :  { %v2831_v14 = vpop.f32.mrb[2].mxu0 }
  0xf5   :  { %v2833_v15 = vpop.f32.mrb[3].mxu0 }
  0xf8   :  { %v2835_v17 = vpop.f32.mrb[4].mxu0 }
  0xf9   :  { %v2837_v18 = vpop.f32.mrb[5].mxu0 }
  0xfc   :  { %v2839_v20 = vpop.f32.mrb[6].mxu0 }
  0xfd   :  { %v2841_v21 = vpop.f32.mrb[7].mxu0 }
 0x15a   :  { %v274_v43 = vpop.f32.mrb[0].mxu1 }
 0x15b   :  { %v279_v44 = vadd.f32 %v274_v43, %v160_v42  ;;  %v2785_v45 = vpop.f32.mrb[1].mxu1 }
 0x15d   :  { %2538 = vtanh.f32 %v279_v44  ;;  %v2116_v47 = vmul.f32 -1.442695, %v279_v44 }
 0x15f   :  { %2540 = vpow2.f32 %v2116_v47 }
 0x167   :  { %v2539_v46 = vpop.eup %2538 }
 0x168   :  { %293 = vrot.lane.b32.xlu0 %v2539_v46, %s2695_s27 }
 0x169   :  { %v2541_v48 = vpop.eup %2540 }
 0x16a   :  { %v283_v49 = vadd.f32 1.0, %v2541_v48 }
 0x16c   :  { %2542 = vrcp.f32 %v283_v49 }
 0x176   :  { %v2543_v50 = vpop.eup %2542 }
 0x177   :  { %v291_v54 = vmul.f32 %v2543_v50, %v289_v53 }
 0x1da   :  { %v294_v51 = vpop.permute.xlu0 %293 }
 0x1db   :  { %v296_v52 = vmul.f32 %v2543_v50, %v294_v51 }
 0x1dd   :  { %298 = vrot.lane.b32.xlu1 %v296_v52, %s2694_s23  ;;  %v165_v52 = vadd.f32 %v2772_v35, %v2782_v41 }
 0x24f   :  { %v299_v55 = vpop.permute.xlu1 %298 }
 0x250   :  { %v2789_v56 = vadd.f32 %v299_v55, %v291_v54 }
 0x252   :  { %2544 = vtanh.f32 %v2789_v56 }
 0x25c   :  { %v2545_v9 = vpop.eup %2544 }
 0x25d   :  { %304 = vrot.lane.b32.xlu0 %v2545_v9, %s2695_s27 }
 0x2cf   :  { %v305_v10 = vpop.permute.xlu0 %304 }
 0x2d0   :  { %v307_v11 = vmul.f32 %v2543_v50, %v305_v10 }
 0x2d2   :  { %309 = vrot.lane.b32.xlu1 %v307_v11, %s2694_s23 }
 0x2d6   :  { %392 = vrot.lane.b32.xlu1 %v55_v13, %s2694_s23 }
 0x344   :  { %v310_v22 = vpop.permute.xlu1 %309 }
 0x345   :  { %2237 = vmatmul.mubr.msk.f32.vlgmr.msra.gmra.mrb[8].mxu0 %vm202_vm1, %v310_v22 }
 0x346   :  { %2383 = vmatpush3.bf16.msra.mxu0 %v2796_v61  ;;  %2247 = vmatprep.mubr.msk.f32.mxu0 %vm2697_vm3, %v2693_v0 }
 0x347   :  { %2384 = vmatprep.subr.bf16.mxu0 %v2696_v60 }
 0x348   :  { %v393_v40 = vpop.permute.xlu1 %392 }
 0x34a   :  { %2386 = vmatpush3.bf16.msra.mxu0 %v2812_v5 }
 0x34b   :  { %2388 = vmatprep.subr.bf16.mxu0 %v2728_v4 }
 0x418   :  { %v379_v25 = vpop.f32.mrb[8].mxu0 }
 0x419   :  { %v380_v26 = vadd.f32 %v379_v25, %v2785_v45  ;;  %v2238_v29 = vpop.f32.mrb[9].mxu0 }
 0x41b   :  { %v383_v30 = vadd.f32 %v380_v26, %v2854_v24 }
 0x41d   :  { %2546 = vtanh.f32 %v383_v30  ;;  %v2118_v33 = vmul.f32 -1.442695, %v383_v30 }
 0x41f   :  { %2548 = vpow2.f32 %v2118_v33 }
 0x427   :  { %v2547_v32 = vpop.eup %2546 }
 0x428   :  { %397 = vrot.lane.b32.xlu0 %v2547_v32, %s2695_s27 }
 0x429   :  { %v2549_v34 = vpop.eup %2548 }
 0x42a   :  { %v387_v36 = vadd.f32 1.0, %v2549_v34 }
 0x42c   :  { %2550 = vrcp.f32 %v387_v36 }
 0x436   :  { %v2551_v37 = vpop.eup %2550 }
 0x437   :  { %v395_v44 = vmul.f32 %v2551_v37, %v393_v40 }
 0x49a   :  { %v398_v42 = vpop.permute.xlu0 %397 }
 0x49b   :  { %v400_v43 = vmul.f32 %v2551_v37, %v398_v42 }
 0x49d   :  { %402 = vrot.lane.b32.xlu0 %v400_v43, %s2694_s23 }
 0x50f   :  { %v403_v45 = vpop.permute.xlu0 %402 }
 0x510   :  { %v2860_v46 = vadd.f32 %v403_v45, %v395_v44 }
 0x512   :  { %2552 = vtanh.f32 %v2860_v46 }
 0x51c   :  { %v2553_v47 = vpop.eup %2552 }
 0x51d   :  { %408 = vrot.lane.b32.xlu1 %v2553_v47, %s2695_s27 }
 0x58f   :  { %v409_v48 = vpop.permute.xlu1 %408 }
 0x590   :  { %v411_v49 = vmul.f32 %v2551_v37, %v409_v48 }
 0x592   :  { %414 = vrot.lane.b32.xlu0 %v411_v49, %s2695_s27 }
 0x604   :  { %v415_v50 = vpop.permute.xlu0 %414 }
 0x605   :  { %v417_v51 = vsel %vm202_vm1, %v310_v22, %v415_v50 }
 0x606   :  { %2119 = vmatmul.mubr.msk.f32.vlgmr.msra.gmra.mrb[2].mxu1 %vm204_vm2, %v417_v51 }
 0x607   :  { %2405 = vmatpush3.bf16.msra.mxu1 %v2796_v61  ;;  %2258 = vmatprep.mubr.msk.f32.mxu1 %vm2697_vm3, %v2693_v0 }
 0x608   :  { %2406 = vmatprep.subr.bf16.mxu1 %v2696_v60 }
 0x60b   :  { %2408 = vmatpush3.bf16.msra.mxu1 %v2812_v5 }
 0x60c   :  { %2410 = vmatprep.subr.bf16.mxu1 %v2728_v4 }
 0x6d9   :  { %v487_v53 = vpop.f32.mrb[2].mxu1 }
 0x6da   :  { %v492_v54 = vadd.f32 %v487_v53, %v165_v52  ;;  %v489_v55 = vpop.f32.mrb[3].mxu1 }
 0x6dc   :  { %2554 = vtanh.f32 %v492_v54  ;;  %v2120_v58 = vmul.f32 -1.442695, %v492_v54 }
 0x6de   :  { %2556 = vpow2.f32 %v2120_v58 }
 0x6e6   :  { %v2555_v57 = vpop.eup %2554 }
 0x6e7   :  { %502 = vrot.lane.b32.xlu1 %v2555_v57, %s2695_s27 }
 0x6e8   :  { %v2557_v59 = vpop.eup %2556 }
 0x6e9   :  { %v496_v62 = vadd.f32 1.0, %v2557_v59 }
 0x6eb   :  { %2558 = vrcp.f32 %v496_v62 }
 0x6f5   :  { %v2559_v63 = vpop.eup %2558 }
 0x6f6   :  { %v500_v3 = vmul.f32 %v2559_v63, %v2789_v56 }
 0x759   :  { %v503_v1 = vpop.permute.xlu1 %502 }
 0x75a   :  { %v505_v2 = vmul.f32 %v2559_v63, %v503_v1 }
 0x75c   :  { %507 = vrot.lane.b32.xlu0 %v505_v2, %s2694_s23 }
 0x7ce   :  { %v508_v35 = vpop.permute.xlu0 %507 }
 0x7cf   :  { %v2878_v6 = vadd.f32 %v508_v35, %v500_v3 }
 0x7d1   :  { %2560 = vtanh.f32 %v2878_v6 }
 0x7db   :  { %v2561_v7 = vpop.eup %2560 }
 0x7dc   :  { %513 = vrot.lane.b32.xlu1 %v2561_v7, %s2695_s27 }
 0x84e   :  { %v514_v9 = vpop.permute.xlu1 %513 }
 0x84f   :  { %v516_v10 = vmul.f32 %v2559_v63, %v514_v9 }
 0x851   :  { %518 = vrot.lane.b32.xlu0 %v516_v10, %s2694_s23 }
 0x8c3   :  { %v519_v11 = vpop.permute.xlu0 %518 }
 0x8c4   :  { %2248 = vmatmul.mubr.msk.f32.vlgmr.msra.gmra.mrb[10].mxu0 %vm202_vm1, %v519_v11 }
 0x8c5   :  { %2390 = vmatpush1.bf16.msra.mxu0 %v2730_v8  ;;  %690 = vmatprep.mubr.f32.mxu0 %v2693_v0 }
 0x8c6   :  { %2392 = vmatprep.subr.bf16.mxu0 %v2733_v12 }
 0x8c9   :  { %2394 = vmatpush1.bf16.msra.mxu0 %v2736_v16 }
 0x8ca   :  { %2396 = vmatprep.subr.bf16.mxu0 %v2739_v19 }
 0x8cd   :  { %2398 = vmatpush1.bf16.msra.mxu0 %v2749_v27 }
 0x8ce   :  { %2400 = vmatprep.subr.bf16.mxu0 %v2753_v28 }
 0x8d1   :  { %2402 = vmatpush1.bf16.msra.mxu0 %v2757_v31 }
 0x8d2   :  { %2425 = vmatprep.subr.bf16.mxu0 %v2696_v60 }
 0x997   :  { %v588_v56 = vpop.f32.mrb[10].mxu0 }
 0x998   :  { %v589_v13 = vadd.f32 %v588_v56, %v489_v55  ;;  %v2249_v22 = vpop.f32.mrb[11].mxu0 }
 0x99a   :  { %v592_v25 = vadd.f32 %v589_v13, %v2854_v24 }
 0x99c   :  { %2562 = vtanh.f32 %v592_v25  ;;  %v2122_v29 = vmul.f32 -1.442695, %v592_v25 }
 0x99e   :  { %2564 = vpow2.f32 %v2122_v29 }
 0x9a6   :  { %v2563_v26 = vpop.eup %2562 }
 0x9a7   :  { %602 = vrot.lane.b32.xlu1 %v2563_v26, %s2695_s27 }
 0x9a8   :  { %v2565_v30 = vpop.eup %2564 }
 0x9a9   :  { %v596_v32 = vadd.f32 1.0, %v2565_v30 }
 0x9ab   :  { %2566 = vrcp.f32 %v596_v32 }
 0x9b5   :  { %v2567_v33 = vpop.eup %2566 }
 0x9b6   :  { %v600_v37 = vmul.f32 %v2567_v33, %v2860_v46  ;;  %v170_v46 = vadd.f32 %v2833_v15, %v2782_v41 }
 0xa19   :  { %v603_v34 = vpop.permute.xlu1 %602 }
 0xa1a   :  { %v605_v36 = vmul.f32 %v2567_v33, %v603_v34 }
 0xa1c   :  { %607 = vrot.lane.b32.xlu0 %v605_v36, %s2694_s23 }
 0xa8e   :  { %v608_v42 = vpop.permute.xlu0 %607 }
 0xa8f   :  { %v2897_v43 = vadd.f32 %v608_v42, %v600_v37 }
 0xa91   :  { %2568 = vtanh.f32 %v2897_v43 }
 0xa9b   :  { %v2569_v40 = vpop.eup %2568 }
 0xa9c   :  { %613 = vrot.lane.b32.xlu1 %v2569_v40, %s2695_s27 }
 0xb0e   :  { %v614_v44 = vpop.permute.xlu1 %613 }
 0xb0f   :  { %v616_v45 = vmul.f32 %v2567_v33, %v614_v44 }
 0xb11   :  { %619 = vrot.lane.b32.xlu0 %v616_v45, %s2695_s27 }
 0xb83   :  { %v620_v47 = vpop.permute.xlu0 %619 }
 0xb84   :  { %v622_v48 = vsel %vm202_vm1, %v519_v11, %v620_v47 }
 0xb85   :  { %2123 = vmatmul.mubr.msk.f32.vlgmr.msra.gmra.mrb[12].mxu0 %vm204_vm2, %v622_v48 }
 0xb86   :  { %2427 = vmatpush3.bf16.msra.mxu0 %v2796_v61  ;;  %2269 = vmatprep.mubr.msk.f32.mxu0 %vm2697_vm3, %v2693_v0 }
 0xb87   :  { %2428 = vmatprep.subr.bf16.mxu0 %v2696_v60 }
 0xb8a   :  { %2430 = vmatpush3.bf16.msra.mxu0 %v2812_v5 }
 0xb8b   :  { %2432 = vmatprep.subr.bf16.mxu0 %v2728_v4 }
 0xc58   :  { %v692_v49 = vpop.f32.mrb[12].mxu0 }
 0xc59   :  { %v697_v50 = vadd.f32 %v692_v49, %v170_v46  ;;  %v694_v51 = vpop.f32.mrb[13].mxu0 }
 0xc5b   :  { %2570 = vtanh.f32 %v697_v50  ;;  %v2124_v53 = vmul.f32 -1.442695, %v697_v50 }
 0xc5d   :  { %2572 = vpow2.f32 %v2124_v53 }
 0xc65   :  { %v2571_v52 = vpop.eup %2570 }
 0xc66   :  { %707 = vrot.lane.b32.xlu1 %v2571_v52, %s2695_s27 }
 0xc67   :  { %v2573_v54 = vpop.eup %2572 }
 0xc68   :  { %v701_v55 = vadd.f32 1.0, %v2573_v54 }
 0xc6a   :  { %2574 = vrcp.f32 %v701_v55 }
 0xc74   :  { %v2575_v57 = vpop.eup %2574 }
 0xc75   :  { %v705_v62 = vmul.f32 %v2575_v57, %v2878_v6 }
 0xcd8   :  { %v708_v58 = vpop.permute.xlu1 %707 }
 0xcd9   :  { %v710_v59 = vmul.f32 %v2575_v57, %v708_v58 }
 0xcdb   :  { %712 = vrot.lane.b32.xlu0 %v710_v59, %s2694_s23 }
 0xd4d   :  { %v713_v15 = vpop.permute.xlu0 %712 }
 0xd4e   :  { %v2915_v63 = vadd.f32 %v713_v15, %v705_v62 }
 0xd50   :  { %2576 = vtanh.f32 %v2915_v63 }
 0xd5a   :  { %v2577_v1 = vpop.eup %2576 }
 0xd5b   :  { %718 = vrot.lane.b32.xlu1 %v2577_v1, %s2695_s27 }
 0xdcd   :  { %v719_v2 = vpop.permute.xlu1 %718 }
 0xdce   :  { %v721_v3 = vmul.f32 %v2575_v57, %v719_v2 }
 0xdd0   :  { %723 = vrot.lane.b32.xlu0 %v721_v3, %s2694_s23 }
 0xe42   :  { %v724_v35 = vpop.permute.xlu0 %723 }
 0xe43   :  { %2259 = vmatmul.mubr.msk.f32.vlgmr.msra.gmra.mrb[4].mxu1 %vm202_vm1, %v724_v35 }
 0xe44   :  { %2412 = vmatpush1.bf16.msra.mxu1 %v2730_v8  ;;  %895 = vmatprep.mubr.f32.mxu1 %v2693_v0 }
 0xe45   :  { %2414 = vmatprep.subr.bf16.mxu1 %v2733_v12 }
 0xe48   :  { %2416 = vmatpush1.bf16.msra.mxu1 %v2736_v16 }
 0xe49   :  { %2418 = vmatprep.subr.bf16.mxu1 %v2739_v19 }
 0xe4c   :  { %2420 = vmatpush1.bf16.msra.mxu1 %v2749_v27 }
 0xe4d   :  { %2422 = vmatprep.subr.bf16.mxu1 %v2753_v28 }
 0xe50   :  { %2424 = vmatpush1.bf16.msra.mxu1 %v2757_v31 }
 0xe51   :  { %2447 = vmatprep.subr.bf16.mxu1 %v2696_v60 }
 0xf16   :  { %v793_v6 = vpop.f32.mrb[4].mxu1 }
 0xf17   :  { %v794_v7 = vadd.f32 %v793_v6, %v694_v51  ;;  %v2260_v9 = vpop.f32.mrb[5].mxu1 }
 0xf19   :  { %v797_v10 = vadd.f32 %v794_v7, %v2854_v24 }
 0xf1b   :  { %2578 = vtanh.f32 %v797_v10  ;;  %v2126_v56 = vmul.f32 -1.442695, %v797_v10 }
 0xf1d   :  { %2580 = vpow2.f32 %v2126_v56 }
 0xf25   :  { %v2579_v11 = vpop.eup %2578 }
 0xf26   :  { %807 = vrot.lane.b32.xlu1 %v2579_v11, %s2695_s27 }
 0xf27   :  { %v2581_v13 = vpop.eup %2580 }
 0xf28   :  { %v801_v22 = vadd.f32 1.0, %v2581_v13 }
 0xf2a   :  { %2582 = vrcp.f32 %v801_v22 }
 0xf34   :  { %v2583_v25 = vpop.eup %2582 }
 0xf35   :  { %v805_v30 = vmul.f32 %v2583_v25, %v2897_v43  ;;  %v175_v43 = vadd.f32 %v2831_v14, %v2782_v41 }
 0xf98   :  { %v808_v26 = vpop.permute.xlu1 %807 }
 0xf99   :  { %v810_v29 = vmul.f32 %v2583_v25, %v808_v26 }
 0xf9b   :  { %812 = vrot.lane.b32.xlu0 %v810_v29, %s2694_s23 }
0x100d   :  { %v813_v32 = vpop.permute.xlu0 %812 }
0x100e   :  { %v2934_v33 = vadd.f32 %v813_v32, %v805_v30 }
0x1010   :  { %2584 = vtanh.f32 %v2934_v33 }
0x101a   :  { %v2585_v34 = vpop.eup %2584 }
0x101b   :  { %818 = vrot.lane.b32.xlu1 %v2585_v34, %s2695_s27 }
0x108d   :  { %v819_v36 = vpop.permute.xlu1 %818 }
0x108e   :  { %v821_v37 = vmul.f32 %v2583_v25, %v819_v36 }
0x1090   :  { %824 = vrot.lane.b32.xlu0 %v821_v37, %s2695_s27 }
0x1102   :  { %v825_v42 = vpop.permute.xlu0 %824 }
0x1103   :  { %v827_v40 = vsel %vm202_vm1, %v724_v35, %v825_v42 }
0x1104   :  { %2127 = vmatmul.mubr.msk.f32.vlgmr.msra.gmra.mrb[6].mxu1 %vm204_vm2, %v827_v40 }
0x1105   :  { %2449 = vmatpush3.bf16.msra.mxu1 %v2796_v61  ;;  %2280 = vmatprep.mubr.msk.f32.mxu1 %vm2697_vm3, %v2693_v0 }
0x1106   :  { %2450 = vmatprep.subr.bf16.mxu1 %v2696_v60 }
0x1109   :  { %2452 = vmatpush3.bf16.msra.mxu1 %v2812_v5 }
0x110a   :  { %2454 = vmatprep.subr.bf16.mxu1 %v2728_v4 }
0x11d7   :  { %v897_v44 = vpop.f32.mrb[6].mxu1 }
0x11d8   :  { %v902_v45 = vadd.f32 %v897_v44, %v175_v43  ;;  %v899_v47 = vpop.f32.mrb[7].mxu1 }
0x11da   :  { %2586 = vtanh.f32 %v902_v45  ;;  %v2128_v46 = vmul.f32 -1.442695, %v902_v45 }
0x11dc   :  { %2588 = vpow2.f32 %v2128_v46 }
0x11e4   :  { %v2587_v48 = vpop.eup %2586 }
0x11e5   :  { %912 = vrot.lane.b32.xlu1 %v2587_v48, %s2695_s27 }
0x11e6   :  { %v2589_v49 = vpop.eup %2588 }
0x11e7   :  { %v906_v50 = vadd.f32 1.0, %v2589_v49 }
0x11e9   :  { %2590 = vrcp.f32 %v906_v50 }
0x11f3   :  { %v2591_v51 = vpop.eup %2590 }
0x11f4   :  { %v910_v54 = vmul.f32 %v2591_v51, %v2915_v63 }
0x1257   :  { %v913_v52 = vpop.permute.xlu1 %912 }
0x1258   :  { %v915_v53 = vmul.f32 %v2591_v51, %v913_v52 }
0x125a   :  { %917 = vrot.lane.b32.xlu0 %v915_v53, %s2694_s23 }
0x12cc   :  { %v918_v14 = vpop.permute.xlu0 %917 }
0x12cd   :  { %v2952_v55 = vadd.f32 %v918_v14, %v910_v54 }
0x12cf   :  { %2592 = vtanh.f32 %v2952_v55 }
0x12d9   :  { %v2593_v57 = vpop.eup %2592 }
0x12da   :  { %923 = vrot.lane.b32.xlu1 %v2593_v57, %s2695_s27 }
0x134c   :  { %v924_v58 = vpop.permute.xlu1 %923 }
0x134d   :  { %v926_v59 = vmul.f32 %v2591_v51, %v924_v58 }
0x134f   :  { %928 = vrot.lane.b32.xlu0 %v926_v59, %s2694_s23 }
0x13c1   :  { %v929_v62 = vpop.permute.xlu0 %928 }
0x13c2   :  { %2270 = vmatmul.mubr.msk.f32.vlgmr.msra.gmra.mrb[14].mxu0 %vm202_vm1, %v929_v62 }
0x13c3   :  { %2434 = vmatpush1.bf16.msra.mxu0 %v2730_v8  ;;  %1100 = vmatprep.mubr.f32.mxu0 %v2693_v0 }
0x13c4   :  { %2436 = vmatprep.subr.bf16.mxu0 %v2733_v12 }
0x13c7   :  { %2438 = vmatpush1.bf16.msra.mxu0 %v2736_v16 }
0x13c8   :  { %2440 = vmatprep.subr.bf16.mxu0 %v2739_v19 }
0x13cb   :  { %2442 = vmatpush1.bf16.msra.mxu0 %v2749_v27 }
0x13cc   :  { %2444 = vmatprep.subr.bf16.mxu0 %v2753_v28 }
0x13cf   :  { %2446 = vmatpush1.bf16.msra.mxu0 %v2757_v31 }
0x13d0   :  { %2469 = vmatprep.subr.bf16.mxu0 %v2696_v60 }
0x1495   :  { %v998_v15 = vpop.f32.mrb[14].mxu0 }
0x1496   :  { %v999_v63 = vadd.f32 %v998_v15, %v899_v47  ;;  %v2271_v1 = vpop.f32.mrb[15].mxu0 }
0x1498   :  { %v1002_v2 = vadd.f32 %v999_v63, %v2854_v24 }
0x149a   :  { %2594 = vtanh.f32 %v1002_v2  ;;  %v2130_v35 = vmul.f32 -1.442695, %v1002_v2 }
0x149c   :  { %2596 = vpow2.f32 %v2130_v35 }
0x14a4   :  { %v2595_v3 = vpop.eup %2594 }
0x14a5   :  { %1012 = vrot.lane.b32.xlu1 %v2595_v3, %s2695_s27 }
0x14a6   :  { %v2597_v6 = vpop.eup %2596 }
0x14a7   :  { %v1006_v7 = vadd.f32 1.0, %v2597_v6 }
0x14a9   :  { %2598 = vrcp.f32 %v1006_v7 }
0x14b3   :  { %v2599_v9 = vpop.eup %2598 }
0x14b4   :  { %v1010_v56 = vmul.f32 %v2599_v9, %v2934_v33  ;;  %v180_v33 = vadd.f32 %v2837_v18, %v2782_v41 }
0x1517   :  { %v1013_v10 = vpop.permute.xlu1 %1012 }
0x1518   :  { %v1015_v11 = vmul.f32 %v2599_v9, %v1013_v10 }
0x151a   :  { %1017 = vrot.lane.b32.xlu0 %v1015_v11, %s2694_s23 }
0x158c   :  { %v1018_v13 = vpop.permute.xlu0 %1017 }
0x158d   :  { %v2971_v22 = vadd.f32 %v1018_v13, %v1010_v56  ;;  %v185_v13 = vadd.f32 %v2835_v17, %v2782_v41 }
0x158f   :  { %2600 = vtanh.f32 %v2971_v22 }
0x1599   :  { %v2601_v25 = vpop.eup %2600 }
0x159a   :  { %1023 = vrot.lane.b32.xlu1 %v2601_v25, %s2695_s27 }
0x160c   :  { %v1024_v26 = vpop.permute.xlu1 %1023 }
0x160d   :  { %v1026_v29 = vmul.f32 %v2599_v9, %v1024_v26 }
0x160f   :  { %1029 = vrot.lane.b32.xlu0 %v1026_v29, %s2695_s27 }
0x1681   :  { %v1030_v30 = vpop.permute.xlu0 %1029 }
0x1682   :  { %v1032_v32 = vsel %vm202_vm1, %v929_v62, %v1030_v30 }
0x1683   :  { %2131 = vmatmul.mubr.msk.f32.vlgmr.msra.gmra.mrb[16].mxu0 %vm204_vm2, %v1032_v32 }
0x1684   :  { %2471 = vmatpush3.bf16.msra.mxu0 %v2796_v61  ;;  %2291 = vmatprep.mubr.msk.f32.mxu0 %vm2697_vm3, %v2693_v0 }
0x1685   :  { %2472 = vmatprep.subr.bf16.mxu0 %v2696_v60 }
0x1688   :  { %2474 = vmatpush3.bf16.msra.mxu0 %v2812_v5 }
0x1689   :  { %2476 = vmatprep.subr.bf16.mxu0 %v2728_v4 }
0x1756   :  { %v1102_v34 = vpop.f32.mrb[16].mxu0 }
0x1757   :  { %v1107_v36 = vadd.f32 %v1102_v34, %v180_v33  ;;  %v1104_v37 = vpop.f32.mrb[17].mxu0 }
0x1759   :  { %2602 = vtanh.f32 %v1107_v36  ;;  %v2132_v40 = vmul.f32 -1.442695, %v1107_v36 }
0x175b   :  { %2604 = vpow2.f32 %v2132_v40 }
0x1763   :  { %v2603_v42 = vpop.eup %2602 }
0x1764   :  { %1117 = vrot.lane.b32.xlu1 %v2603_v42, %s2695_s27 }
0x1765   :  { %v2605_v43 = vpop.eup %2604 }
0x1766   :  { %v1111_v44 = vadd.f32 1.0, %v2605_v43 }
0x1768   :  { %2606 = vrcp.f32 %v1111_v44 }
0x1772   :  { %v2607_v45 = vpop.eup %2606 }
0x1773   :  { %v1115_v46 = vmul.f32 %v2607_v45, %v2952_v55 }
0x17d6   :  { %v1118_v47 = vpop.permute.xlu1 %1117 }
0x17d7   :  { %v1120_v48 = vmul.f32 %v2607_v45, %v1118_v47 }
0x17d9   :  { %1122 = vrot.lane.b32.xlu0 %v1120_v48, %s2694_s23 }
0x184b   :  { %v1123_v18 = vpop.permute.xlu0 %1122 }
0x184c   :  { %v2989_v49 = vadd.f32 %v1123_v18, %v1115_v46 }
0x184e   :  { %2608 = vtanh.f32 %v2989_v49 }
0x1858   :  { %v2609_v50 = vpop.eup %2608 }
0x1859   :  { %1128 = vrot.lane.b32.xlu1 %v2609_v50, %s2695_s27 }
0x18cb   :  { %v1129_v51 = vpop.permute.xlu1 %1128 }
0x18cc   :  { %v1131_v52 = vmul.f32 %v2607_v45, %v1129_v51 }
0x18ce   :  { %1133 = vrot.lane.b32.xlu0 %v1131_v52, %s2694_s23 }
0x1940   :  { %v1134_v53 = vpop.permute.xlu0 %1133 }
0x1941   :  { %2281 = vmatmul.mubr.msk.f32.vlgmr.msra.gmra.mrb[8].mxu1 %vm202_vm1, %v1134_v53 }
0x1942   :  { %2456 = vmatpush1.bf16.msra.mxu1 %v2730_v8  ;;  %1305 = vmatprep.mubr.f32.mxu1 %v2693_v0 }
0x1943   :  { %2458 = vmatprep.subr.bf16.mxu1 %v2733_v12 }
0x1946   :  { %2460 = vmatpush1.bf16.msra.mxu1 %v2736_v16 }
0x1947   :  { %2462 = vmatprep.subr.bf16.mxu1 %v2739_v19 }
0x194a   :  { %2464 = vmatpush1.bf16.msra.mxu1 %v2749_v27 }
0x194b   :  { %2466 = vmatprep.subr.bf16.mxu1 %v2753_v28 }
0x194e   :  { %2468 = vmatpush1.bf16.msra.mxu1 %v2757_v31 }
0x194f   :  { %2491 = vmatprep.subr.bf16.mxu1 %v2696_v60 }
0x1a14   :  { %v1203_v54 = vpop.f32.mrb[8].mxu1 }
0x1a15   :  { %v1204_v14 = vadd.f32 %v1203_v54, %v1104_v37  ;;  %v2282_v55 = vpop.f32.mrb[9].mxu1 }
0x1a17   :  { %v1207_v57 = vadd.f32 %v1204_v14, %v2854_v24 }
0x1a19   :  { %2610 = vtanh.f32 %v1207_v57  ;;  %v2134_v59 = vmul.f32 -1.442695, %v1207_v57 }
0x1a1b   :  { %2612 = vpow2.f32 %v2134_v59 }
0x1a23   :  { %v2611_v58 = vpop.eup %2610 }
0x1a24   :  { %1217 = vrot.lane.b32.xlu1 %v2611_v58, %s2695_s27 }
0x1a25   :  { %v2613_v62 = vpop.eup %2612 }
0x1a26   :  { %v1211_v15 = vadd.f32 1.0, %v2613_v62 }
0x1a28   :  { %2614 = vrcp.f32 %v1211_v15 }
0x1a32   :  { %v2615_v63 = vpop.eup %2614 }
0x1a33   :  { %v1215_v3 = vmul.f32 %v2615_v63, %v2971_v22 }
0x1a96   :  { %v1218_v1 = vpop.permute.xlu1 %1217 }
0x1a97   :  { %v1220_v2 = vmul.f32 %v2615_v63, %v1218_v1 }
0x1a99   :  { %1222 = vrot.lane.b32.xlu0 %v1220_v2, %s2694_s23  ;;  %v190_v2 = vadd.f32 %v2841_v21, %v2782_v41 }
0x1b0b   :  { %v1223_v35 = vpop.permute.xlu0 %1222 }
0x1b0c   :  { %v3008_v6 = vadd.f32 %v1223_v35, %v1215_v3 }
0x1b0e   :  { %2616 = vtanh.f32 %v3008_v6 }
0x1b18   :  { %v2617_v7 = vpop.eup %2616 }
0x1b19   :  { %1228 = vrot.lane.b32.xlu1 %v2617_v7, %s2695_s27 }
0x1b8b   :  { %v1229_v9 = vpop.permute.xlu1 %1228 }
0x1b8c   :  { %v1231_v10 = vmul.f32 %v2615_v63, %v1229_v9 }
0x1b8e   :  { %1234 = vrot.lane.b32.xlu0 %v1231_v10, %s2695_s27 }
0x1c00   :  { %v1235_v11 = vpop.permute.xlu0 %1234 }
0x1c01   :  { %v1237_v56 = vsel %vm202_vm1, %v1134_v53, %v1235_v11 }
0x1c02   :  { %2135 = vmatmul.mubr.msk.f32.vlgmr.msra.gmra.mrb[10].mxu1 %vm204_vm2, %v1237_v56 }
0x1c03   :  { %2493 = vmatpush3.bf16.msra.mxu1 %v2796_v61  ;;  %2302 = vmatprep.mubr.msk.f32.mxu1 %vm2697_vm3, %v2693_v0 }
0x1c04   :  { %2494 = vmatprep.subr.bf16.mxu1 %v2696_v60 }
0x1c07   :  { %2496 = vmatpush3.bf16.msra.mxu1 %v2812_v5 }
0x1c08   :  { %2498 = vmatprep.subr.bf16.mxu1 %v2728_v4 }
0x1cd5   :  { %v1307_v22 = vpop.f32.mrb[10].mxu1 }
0x1cd6   :  { %v1312_v25 = vadd.f32 %v1307_v22, %v185_v13  ;;  %v1309_v26 = vpop.f32.mrb[11].mxu1 }
0x1cd8   :  { %2618 = vtanh.f32 %v1312_v25  ;;  %v2136_v30 = vmul.f32 -1.442695, %v1312_v25 }
0x1cda   :  { %2620 = vpow2.f32 %v2136_v30 }
0x1ce2   :  { %v2619_v29 = vpop.eup %2618 }
0x1ce3   :  { %1322 = vrot.lane.b32.xlu1 %v2619_v29, %s2695_s27 }
0x1ce4   :  { %v2621_v32 = vpop.eup %2620 }
0x1ce5   :  { %v1316_v33 = vadd.f32 1.0, %v2621_v32 }
0x1ce7   :  { %2622 = vrcp.f32 %v1316_v33 }
0x1cf1   :  { %v2623_v34 = vpop.eup %2622 }
0x1cf2   :  { %v1320_v4 = vmul.f32 %v2623_v34, %v2989_v49 }
0x1d55   :  { %v1323_v36 = vpop.permute.xlu1 %1322 }
0x1d56   :  { %v1325_v37 = vmul.f32 %v2623_v34, %v1323_v36 }
0x1d58   :  { %1327 = vrot.lane.b32.xlu0 %v1325_v37, %s2694_s23 }
0x1dca   :  { %v1328_v17 = vpop.permute.xlu0 %1327 }
0x1dcb   :  { %v3026_v42 = vadd.f32 %v1328_v17, %v1320_v4 }
0x1dcd   :  { %2624 = vtanh.f32 %v3026_v42 }
0x1dd7   :  { %v2625_v40 = vpop.eup %2624 }
0x1dd8   :  { %1333 = vrot.lane.b32.xlu1 %v2625_v40, %s2695_s27 }
0x1e4a   :  { %v1334_v43 = vpop.permute.xlu1 %1333 }
0x1e4b   :  { %v1336_v44 = vmul.f32 %v2623_v34, %v1334_v43 }
0x1e4d   :  { %1338 = vrot.lane.b32.xlu0 %v1336_v44, %s2694_s23 }
0x1ebf   :  { %v1339_v45 = vpop.permute.xlu0 %1338 }
0x1ec0   :  { %2292 = vmatmul.mubr.msk.f32.vlgmr.msra.gmra.mrb[18].mxu0 %vm202_vm1, %v1339_v45 }
0x1ec1   :  { %2478 = vmatpush1.bf16.msra.mxu0 %v2730_v8  ;;  %1510 = vmatprep.mubr.f32.mxu0 %v2693_v0 }
0x1ec2   :  { %2480 = vmatprep.subr.bf16.mxu0 %v2733_v12 }
0x1ec5   :  { %2482 = vmatpush1.bf16.msra.mxu0 %v2736_v16 }
0x1ec6   :  { %2484 = vmatprep.subr.bf16.mxu0 %v2739_v19 }
0x1ec9   :  { %2486 = vmatpush1.bf16.msra.mxu0 %v2749_v27 }
0x1eca   :  { %2488 = vmatprep.subr.bf16.mxu0 %v2753_v28 }
0x1ecd   :  { %2490 = vmatpush1.bf16.msra.mxu0 %v2757_v31 }
0x1ece   :  { %2513 = vmatprep.subr.bf16.mxu0 %v2696_v60 }
0x1f93   :  { %v1408_v47 = vpop.f32.mrb[18].mxu0 }
0x1f94   :  { %v1409_v48 = vadd.f32 %v1408_v47, %v1309_v26  ;;  %v2293_v46 = vpop.f32.mrb[19].mxu0  ;;  %v195_v47 = vadd.f32 %v2839_v20, %v2782_v41 }
0x1f96   :  { %v1412_v18 = vadd.f32 %v1409_v48, %v2854_v24 }
0x1f98   :  { %2626 = vtanh.f32 %v1412_v18  ;;  %v2138_v50 = vmul.f32 -1.442695, %v1412_v18 }
0x1f9a   :  { %2628 = vpow2.f32 %v2138_v50 }
0x1fa2   :  { %v2627_v49 = vpop.eup %2626 }
0x1fa3   :  { %1422 = vrot.lane.b32.xlu1 %v2627_v49, %s2695_s27 }
0x1fa4   :  { %v2629_v51 = vpop.eup %2628 }
0x1fa5   :  { %v1416_v52 = vadd.f32 1.0, %v2629_v51 }
0x1fa7   :  { %2630 = vrcp.f32 %v1416_v52 }
0x1fb1   :  { %v2631_v53 = vpop.eup %2630 }
0x1fb2   :  { %v1420_v55 = vmul.f32 %v2631_v53, %v3008_v6 }
0x2015   :  { %v1423_v54 = vpop.permute.xlu1 %1422 }
0x2016   :  { %v1425_v14 = vmul.f32 %v2631_v53, %v1423_v54 }
0x2018   :  { %1427 = vrot.lane.b32.xlu0 %v1425_v14, %s2694_s23 }
0x208a   :  { %v1428_v57 = vpop.permute.xlu0 %1427 }
0x208b   :  { %v3045_v58 = vadd.f32 %v1428_v57, %v1420_v55 }
0x208d   :  { %2632 = vtanh.f32 %v3045_v58 }
0x2097   :  { %v2633_v59 = vpop.eup %2632 }
0x2098   :  { %1433 = vrot.lane.b32.xlu1 %v2633_v59, %s2695_s27 }
0x210a   :  { %v1434_v62 = vpop.permute.xlu1 %1433 }
0x210b   :  { %v1436_v15 = vmul.f32 %v2631_v53, %v1434_v62 }
0x210d   :  { %1439 = vrot.lane.b32.xlu0 %v1436_v15, %s2695_s27 }
0x217f   :  { %v1440_v63 = vpop.permute.xlu0 %1439 }
0x2180   :  { %v1442_v1 = vsel %vm202_vm1, %v1339_v45, %v1440_v63 }
0x2181   :  { %2139 = vmatmul.mubr.msk.f32.vlgmr.msra.gmra.mrb[20].mxu0 %vm204_vm2, %v1442_v1 }
0x2182   :  { %2515 = vmatpush3.bf16.msra.mxu0 %v2796_v61  ;;  %2313 = vmatprep.mubr.msk.f32.mxu0 %vm2697_vm3, %v2693_v0 }
0x2183   :  { %2516 = vmatprep.subr.bf16.mxu0 %v2696_v60 }
0x2186   :  { %2518 = vmatpush3.bf16.msra.mxu0 %v2812_v5 }
0x2187   :  { %2519 = vmatprep.subr.bf16.mxu0 %v2696_v60 }
0x2254   :  { %v1512_v3 = vpop.f32.mrb[20].mxu0 }
0x2255   :  { %v1517_v35 = vadd.f32 %v1512_v3, %v190_v2  ;;  %v1514_v6 = vpop.f32.mrb[21].mxu0 }
0x2257   :  { %2634 = vtanh.f32 %v1517_v35  ;;  %v2140_v61 = vmul.f32 -1.442695, %v1517_v35 }
0x2259   :  { %2636 = vpow2.f32 %v2140_v61 }
0x2261   :  { %v2635_v7 = vpop.eup %2634 }
0x2262   :  { %1527 = vrot.lane.b32.xlu1 %v2635_v7, %s2695_s27 }
0x2263   :  { %v2637_v9 = vpop.eup %2636 }
0x2264   :  { %v1521_v10 = vadd.f32 1.0, %v2637_v9 }
0x2266   :  { %2638 = vrcp.f32 %v1521_v10 }
0x2270   :  { %v2639_v11 = vpop.eup %2638 }
0x2271   :  { %v1525_v13 = vmul.f32 %v2639_v11, %v3026_v42 }
0x22d4   :  { %v1528_v56 = vpop.permute.xlu1 %1527 }
0x22d5   :  { %v1530_v5 = vmul.f32 %v2639_v11, %v1528_v56 }
0x22d7   :  { %1532 = vrot.lane.b32.xlu0 %v1530_v5, %s2694_s23 }
0x2349   :  { %v1533_v21 = vpop.permute.xlu0 %1532 }
0x234a   :  { %v3063_v22 = vadd.f32 %v1533_v21, %v1525_v13  ;;  %v1847_v13 = vld [vmem:[#allocation2 + $0x130] sm:$0xff] }
0x234b   :  { %v1849_v21 = vld [vmem:[#allocation2 + $0x150] sm:$0xff] }
0x234c   :  { %2640 = vtanh.f32 %v3063_v22 }
0x2356   :  { %v2641_v25 = vpop.eup %2640 }
0x2357   :  { %1538 = vrot.lane.b32.xlu1 %v2641_v25, %s2695_s27  ;;  %v1850_v25 = vld [vmem:[#allocation2 + $0x160] sm:$0xff] }
0x23c9   :  { %v1539_v26 = vpop.permute.xlu1 %1538 }
0x23ca   :  { %v1541_v29 = vmul.f32 %v2639_v11, %v1539_v26  ;;  %v2523_v26 = vpack.c.bf16 %v1850_v25, %v1849_v21 }
0x23cc   :  { %1543 = vrot.lane.b32.xlu0 %v1541_v29, %s2694_s23 }
0x243e   :  { %v1544_v30 = vpop.permute.xlu0 %1543 }
0x243f   :  { %2303 = vmatmul.mubr.msk.f32.vlgmr.msra.gmra.mrb[12].mxu1 %vm202_vm1, %v1544_v30 }
0x2440   :  { %2500 = vmatpush1.bf16.msra.mxu1 %v2730_v8  ;;  %1715 = vmatprep.mubr.f32.mxu1 %v2693_v0 }
0x2441   :  { %2502 = vmatprep.subr.bf16.mxu1 %v2733_v12 }
0x2444   :  { %2504 = vmatpush1.bf16.msra.mxu1 %v2736_v16 }
0x2445   :  { %2506 = vmatprep.subr.bf16.mxu1 %v2739_v19 }
0x2448   :  { %2508 = vmatpush1.bf16.msra.mxu1 %v2749_v27 }
0x2449   :  { %2510 = vmatprep.subr.bf16.mxu1 %v2753_v28 }
0x244c   :  { %2512 = vmatpush1.bf16.msra.mxu1 %v2757_v31 }
0x244d   :  { %2525 = vmatprep.subr.bf16.mxu1 %v2696_v60 }
0x2512   :  { %v1613_v32 = vpop.f32.mrb[12].mxu1 }
0x2513   :  { %v1614_v33 = vadd.f32 %v1613_v32, %v1514_v6  ;;  %v2304_v34 = vpop.f32.mrb[13].mxu1 }
0x2514   :  { %v1851_v34 = vld [vmem:[#allocation2 + $0x170] sm:$0xff] }
0x2515   :  { %v1617_v8 = vadd.f32 %v1614_v33, %v2854_v24 }
0x2517   :  { %2642 = vtanh.f32 %v1617_v8  ;;  %v2142_v12 = vmul.f32 -1.442695, %v1617_v8  ;;  %v1852_v8 = vld [vmem:[#allocation2 + $0x180] sm:$0xff] }
0x2519   :  { %2644 = vpow2.f32 %v2142_v12 }
0x2521   :  { %v2643_v36 = vpop.eup %2642 }
0x2522   :  { %1627 = vrot.lane.b32.xlu1 %v2643_v36, %s2695_s27  ;;  %v1854_v36 = vld [vmem:[#allocation2 + $0x1a0] sm:$0xff] }
0x2523   :  { %v2645_v16 = vpop.eup %2644  ;;  %v1858_v12 = vrot.slane %v1854_v36, %v66_v39  ;;  %v2020_v39 = vsub.s32 2, %v2774_v38 }
0x2524   :  { %v1621_v19 = vadd.f32 1.0, %v2645_v16 }
0x2526   :  { %2646 = vrcp.f32 %v1621_v19 }
0x2530   :  { %v2647_v27 = vpop.eup %2646 }
0x2531   :  { %v1625_v31 = vmul.f32 %v2647_v27, %v3045_v58 }
0x2594   :  { %v1628_v28 = vpop.permute.xlu1 %1627 }
0x2595   :  { %v1630_v37 = vmul.f32 %v2647_v27, %v1628_v28 }
0x2597   :  { %1632 = vrot.lane.b32.xlu0 %v1630_v37, %s2694_s23  ;;  %v1853_v37 = vld [vmem:[#allocation2 + $0x190] sm:$0xff] }
0x2609   :  { %v1633_v4 = vpop.permute.xlu0 %1632 }
0x260a   :  { %v1635_v17 = vadd.f32 %v1633_v4, %v1625_v31 }
0x260c   :  { %2648 = vtanh.f32 %v1635_v17 }
0x2616   :  { %v2649_v42 = vpop.eup %2648 }
0x2617   :  { %1638 = vrot.lane.b32.xlu1 %v2649_v42, %s2695_s27 }
0x2689   :  { %v1639_v40 = vpop.permute.xlu1 %1638 }
0x268a   :  { %v1641_v43 = vmul.f32 %v2647_v27, %v1639_v40  ;;  %v2021_v40 = vrot.slane %v1854_v36, %v2020_v39 }
0x268c   :  { %1644 = vrot.lane.b32.xlu0 %v1641_v43, %s2695_s27 }
0x26fe   :  { %v1645_v44 = vpop.permute.xlu0 %1644 }
0x26ff   :  { %v1647_v45 = vsel %vm202_vm1, %v1544_v30, %v1645_v44 }
0x2700   :  { %2143 = vmatmul.mubr.msk.f32.vlgmr.msra.gmra.mrb[14].mxu1 %vm204_vm2, %v1647_v45 }
0x2701   :  { %2331 = vmatprep.mubr.msk.f32.mxu1 %vm2697_vm3, %v2693_v0 }
0x27d3   :  { %v1717_v48 = vpop.f32.mrb[14].mxu1 }
0x27d4   :  { %v1722_v46 = vadd.f32 %v1717_v48, %v195_v47  ;;  %v1719_v18 = vpop.f32.mrb[15].mxu1 }
0x27d6   :  { %2650 = vtanh.f32 %v1722_v46  ;;  %v2144_v50 = vmul.f32 -1.442695, %v1722_v46 }
0x27d8   :  { %2652 = vpow2.f32 %v2144_v50 }
0x27e0   :  { %v2651_v49 = vpop.eup %2650 }
0x27e1   :  { %1732 = vrot.lane.b32.xlu1 %v2651_v49, %s2695_s27 }
0x27e2   :  { %v2653_v51 = vpop.eup %2652 }
0x27e3   :  { %v1726_v52 = vadd.f32 1.0, %v2653_v51 }
0x27e5   :  { %2654 = vrcp.f32 %v1726_v52 }
0x27ef   :  { %v2655_v53 = vpop.eup %2654 }
0x27f0   :  { %v1730_v55 = vmul.f32 %v2655_v53, %v3063_v22 }
0x2853   :  { %v1733_v54 = vpop.permute.xlu1 %1732 }
0x2854   :  { %v1735_v14 = vmul.f32 %v2655_v53, %v1733_v54 }
0x2856   :  { %1737 = vrot.lane.b32.xlu0 %v1735_v14, %s2694_s23 }
0x28c8   :  { %v1738_v41 = vpop.permute.xlu0 %1737 }
0x28c9   :  { %v1740_v20 = vadd.f32 %v1738_v41, %v1730_v55 }
0x28cb   :  { %2656 = vtanh.f32 %v1740_v20 }
0x28d5   :  { %v2657_v57 = vpop.eup %2656 }
0x28d6   :  { %1743 = vrot.lane.b32.xlu1 %v2657_v57, %s2695_s27 }
0x2948   :  { %v1744_v58 = vpop.permute.xlu1 %1743 }
0x2949   :  { %v1746_v59 = vmul.f32 %v2655_v53, %v1744_v58 }
0x294b   :  { %1748 = vrot.lane.b32.xlu0 %v1746_v59, %s2694_s23 }
0x29bd   :  { %v1749_v62 = vpop.permute.xlu0 %1748 }
0x29be   :  { %2314 = vmatmul.mubr.msk.f32.vlgmr.msra.gmra.mrb[22].mxu0 %vm202_vm1, %v1749_v62 }
0x29bf   :  { %2324 = vmatprep.mubr.msk.f32.mxu0 %vm2697_vm3, %v2693_v0 }
0x2a91   :  { %v1818_v15 = vpop.f32.mrb[22].mxu0 }
0x2a92   :  { %v1819_v63 = vadd.f32 %v1818_v15, %v1719_v18  ;;  %v2315_v1 = vpop.f32.mrb[23].mxu0 }
0x2a94   :  { %v1822_v2 = vadd.f32 %v1819_v63, %v2854_v24  ;;  %v1848_v24 = vld [vmem:[#allocation2 + $0x140] sm:$0xff] }
0x2a95   :  { %v2520_v22 = vpack.c.bf16 %v1848_v24, %v1847_v13 }
0x2a96   :  { %2658 = vtanh.f32 %v1822_v2  ;;  %v2146_v35 = vmul.f32 -1.442695, %v1822_v2 }
0x2a97   :  { %2521 = vmatpush3.bf16.msra.mxu0 %v2520_v22 }
0x2a98   :  { %2660 = vpow2.f32 %v2146_v35  ;;  %2522 = vmatprep.subr.bf16.mxu0 %v2696_v60  ;;  %v2526_v60 = vpack.c.bf16 %v1852_v8, %v1851_v34 }
0x2a9a   :  { %2528 = vmatpush3.bf16.msk.msra.mxu1 %vm2527_vm6, %v2526_v60 }
0x2a9b   :  { %2524 = vmatpush3.bf16.msra.mxu0 %v2523_v26 }
0x2a9c   :  { %2334 = vmatprep.subr.mxu0 %v2693_v0 }
0x2aa0   :  { %v2659_v3 = vpop.eup %2658 }
0x2aa1   :  { %1832 = vrot.lane.b32.xlu1 %v2659_v3, %s2695_s27 }
0x2aa2   :  { %v2661_v6 = vpop.eup %2660 }
0x2aa3   :  { %v1826_v7 = vadd.f32 1.0, %v2661_v6 }
0x2aa5   :  { %2662 = vrcp.f32 %v1826_v7 }
0x2aaf   :  { %v2663_v61 = vpop.eup %2662 }
0x2ab0   :  { %v1830_v11 = vmul.f32 %v2663_v61, %v1635_v17 }
0x2b13   :  { %v1833_v9 = vpop.permute.xlu1 %1832 }
0x2b14   :  { %v1835_v10 = vmul.f32 %v2663_v61, %v1833_v9 }
0x2b16   :  { %1837 = vrot.lane.b32.xlu0 %v1835_v10, %s2694_s23 }
0x2b88   :  { %v1838_v56 = vpop.permute.xlu0 %1837 }
0x2b89   :  { %v1840_v5 = vadd.f32 %v1838_v56, %v1830_v11 }
0x2b8b   :  { %2664 = vtanh.f32 %v1840_v5 }
0x2b95   :  { %v2665_v29 = vpop.eup %2664 }
0x2b96   :  { %1843 = vrot.lane.b32.xlu1 %v2665_v29, %s2695_s27 }
0x2c08   :  { %v1844_v30 = vpop.permute.xlu1 %1843 }
0x2c09   :  { %v1846_v32 = vmul.f32 %v2663_v61, %v1844_v30 }
0x2c0b   :  { %1860 = vrot.lane.b32.xlu0 %v1846_v32, %s2694_s23 }
0x2c7d   :  { %v1861_v33 = vpop.permute.xlu0 %1860 }
0x2c7e   :  { %2325 = vmatmul.mubr.msk.f32.vlgmr.msra.gmra.mrb[24].mxu0 %vm202_vm1, %v1861_v33 }
0x2c7f   :  { %2336 = vmatprep.mubr.msk.f32.mxu0 %vm2697_vm3, %v2693_v0  ;;  %2335 = vmatpush3.msk.msra.mxu0 %vm2026_vm8, %v1853_v37  ;;  %v1938_v0 = vrot.slane %v1854_v36, %v50_v23 }
0x2d51   :  { %v1930_v16 = vpop.f32.mrb[24].mxu0 }
0x2d52   :  { %v1931_v19 = vadd.f32 %v1930_v16, %v1858_v12  ;;  %v2326_v27 = vpop.f32.mrb[25].mxu0 }
0x2d54   :  { %v1934_v28 = vmax.f32 %v1931_v19, 0.0 }
0x2d56   :  { %2332 = vmatmul.mubr.msk.f32.vlgmr.msra.gmra.mrb[16].mxu1 %vm1939_vm7, %v1934_v28 }
0x2e29   :  { %v2013_v31 = vpop.f32.mrb[16].mxu1 }
0x2e2a   :  { %v2014_v4 = vadd.f32 %v2013_v31, %v1938_v0  ;;  %v2333_v17 = vpop.f32.mrb[17].mxu1 }
0x2e2c   :  { %v2017_v42 = vmax.f32 %v2014_v4, 0.0 }
0x2e2e   :  { %2337 = vmatmul.mubr.msk.f32.vlgmr.msra.gmra.mrb[26].mxu0 %vm2022_vm9, %v2017_v42 }
0x2f01   :  { %v2096_v43 = vpop.f32.mrb[26].mxu0 }
0x2f02   :  { %v2097_v44 = vadd.f32 %v2096_v43, %v2021_v40  ;;  %v2338_v45 = vpop.f32.mrb[27].mxu0 }
0x2f04   :  { %2101 = vst.msk [vmem:[%s3118_s2] sm:$0xff] %vm2100_vm10, %v2097_v44 }
0x2f05   :  { %2106 = vsyncpa [#allocation3], 1 }

</bundles_post_ra>
